<compile_context>
chip_gen: v7x
topology: tpu7x:2x2x1
jax: 0.10.0
libtpu: 0.0.40
codegen_flags: <defaults>
</compile_context>

<pallas_src>
import math
from functools import partial

import numpy as np
import jax
import jax.numpy as jnp
from jax.experimental import pallas as pl
from jax.experimental.pallas import tpu as pltpu

LANE = 128
_LN_EPS = 1e-5


# --------------------------------------------------------------------------
# helpers
# --------------------------------------------------------------------------
def _rup(x, m):
    return ((x + m - 1) // m) * m


def _full_spec(shape):
    nd = len(shape)
    return pl.BlockSpec(shape, lambda i, _nd=nd: (0,) * _nd)


# --------------------------------------------------------------------------
# The single fused Pallas kernel
# --------------------------------------------------------------------------
def _graph_ae_kernel(src_oh_ref, dst_oh_ref, nmask_row_ref, u_cat_ref, enc_pe_w_ref,
                     dh_w1_ref, dh_vec_ref,
                     atom_oh_ref, nmask_col_ref, snorm_ref, enc_node_w_ref,
                     lm_w1_ref, lm_vec_ref, lm_w2_ref, lm_b2_ref, target_ref,
                     o_ref, *, k_eig, e_half, mask_token_lane, w_atom, w_pe):
    f32 = jnp.float32
    bf16 = jnp.bfloat16

    # ============== edge path: PE, PE_noise, DistanceHead, to_undirected(mean), smooth-L1
    src_oh = src_oh_ref[...]                                             # [E, N]
    inc = (src_oh - dst_oh_ref[...]).astype(bf16)                        # signed incidence (exact in bf16)

    # one MXU dot covers both the clean and the noised eigvec slabs (lanes [0:K] / [K:2K])
    ducat = jnp.dot(inc, u_cat_ref[...].astype(bf16),
                    preferred_element_type=f32)                          # [E, 2K]
    sq = ducat * ducat
    pe = jnp.sqrt(jnp.sum(sq[:, :k_eig], axis=-1, keepdims=True))        # ||u[src]-u[dst]||      [E,1]
    pe_noise = jnp.sqrt(jnp.sum(sq[:, k_eig:], axis=-1, keepdims=True))  # noised copy            [E,1]

    # TODO(synk): the real `encoder` is an injected nn.Module not defined in the file;
    # deterministic gelu(PE_noise * w_pe) stand-in with matching output shape.
    feat = jax.nn.gelu(pe_noise * enc_pe_w_ref[...])                     # [E, D]

    # DistanceHead: dense(D,128) -> GELU -> LayerNorm(128) -> out_proj(128,1)
    # TODO(synk): jax.nn.gelu is the tanh approximation; torch nn.GELU default is exact erf.
    h = jnp.dot(feat.astype(bf16), dh_w1_ref[...],
                preferred_element_type=f32) + dh_vec_ref[0:1, :]
    h = jax.nn.gelu(h)
    mu = jnp.mean(h, axis=-1, keepdims=True)
    var = jnp.mean(jnp.square(h - mu), axis=-1, keepdims=True)
    hn = (h - mu) * jax.lax.rsqrt(var + _LN_EPS) * dh_vec_ref[1:2, :] + dh_vec_ref[2:3, :]
    s = jnp.sum(hn * dh_vec_ref[3:4, :], axis=-1, keepdims=True)         # out_proj (no bias)  [E,1]
    bo = dh_vec_ref[4:5, :][:, 0:1]                                      # out_proj bias       [1,1]

    # to_undirected(reduce='mean'): prep verified reverse(i) == i + E/2, and PE is
    # direction-symmetric, so pair rows with static half-slices (no ExE matmul, no DMA).
    # TODO(synk): general symmetric edge sets need a reverse-permutation path instead.
    d_sym = 0.5 * (s[:e_half, :] + s[e_half:, :]) + bo                   # [E/2, 1]
    emask = jnp.sum(src_oh * nmask_row_ref[...], axis=-1, keepdims=True)  # edge kept iff src masked [E,1]
    w_pair = emask[:e_half, :] + emask[e_half:, :]
    delta = d_sym - pe[:e_half, :]
    ad = jnp.abs(delta)
    sl1 = jnp.where(ad < 1.0, 0.5 * delta * delta, ad - 0.5)             # smooth-L1, beta=1
    pe_num = jnp.sum(sl1 * w_pair, keepdims=True)
    pe_den = jnp.maximum(jnp.sum(emask, keepdims=True), 1.0)             # ref would NaN at 0/0
    pe_loss = pe_num / pe_den                                            # (1,1)

    # ============== node path: mask tokens, encoder stand-in, MaskLMHead, mean CE
    m_col = nmask_col_ref[...]                                           # [N,1]
    atom_oh = atom_oh_ref[...]                                           # [N, A1P]
    lane_a = jax.lax.broadcasted_iota(jnp.int32, atom_oh.shape, 1)
    mask_tok = (lane_a == mask_token_lane).astype(f32)                   # one_hot(num_atom_type)
    node_in = atom_oh * (1.0 - m_col) + mask_tok * m_col                 # x_masked[:,0] one-hot

    enc_rep = jax.nn.gelu(
        jnp.dot(node_in.astype(bf16), enc_node_w_ref[...],
                preferred_element_type=f32) * snorm_ref[...])            # [N, D]

    h2 = jnp.dot(enc_rep.astype(bf16), lm_w1_ref[...],
                 preferred_element_type=f32) + lm_vec_ref[0:1, :]
    h2 = jax.nn.gelu(h2)
    mu2 = jnp.mean(h2, axis=-1, keepdims=True)
    var2 = jnp.mean(jnp.square(h2 - mu2), axis=-1, keepdims=True)
    hn2 = (h2 - mu2) * jax.lax.rsqrt(var2 + _LN_EPS) * lm_vec_ref[1:2, :] + lm_vec_ref[2:3, :]
    logits = jnp.dot(hn2.astype(bf16), lm_w2_ref[...],
                     preferred_element_type=f32) + lm_b2_ref[...]        # [N, C]

    # mean cross-entropy over the masked nodes (weight = node_mask, den = #masked)
    # TODO(synk): only atom_recon_type='ce' is implemented ('sce'/'mse' branches omitted).
    zmax = jnp.max(logits, axis=-1, keepdims=True)
    lse = zmax + jnp.log(jnp.sum(jnp.exp(logits - zmax), axis=-1, keepdims=True))
    nll = lse - jnp.sum(target_ref[...] * logits, axis=-1, keepdims=True)  # [N,1]
    atom_num = jnp.sum(nll * m_col, keepdims=True)
    atom_den = jnp.maximum(jnp.sum(m_col, keepdims=True), 1.0)
    atom_loss = atom_num / atom_den                                      # (1,1)

    # ============== fused output row: lane0 = cfg-weighted total, lane1 = pe, lane2 = atom
    total = w_atom * atom_loss + w_pe * pe_loss
    lane = jax.lax.broadcasted_iota(jnp.int32, o_ref.shape, 1)
    o_ref[...] = (jnp.where(lane == 0, total, 0.0)
                  + jnp.where(lane == 1, pe_loss, 0.0)
                  + jnp.where(lane == 2, atom_loss, 0.0))


# --------------------------------------------------------------------------
# pallas_call wrapper (per-step path)
# --------------------------------------------------------------------------
def graph_autoencoder_loss(kparams, gconsts, u_cat, node_mask, cfg):
    e = gconsts["src_oh"].shape[0]
    k = u_cat.shape[1] // 2
    inputs = (
        gconsts["src_oh"], gconsts["dst_oh"],
        node_mask[None, :], u_cat,
        kparams["enc_pe_w"], kparams["dh_w1"], kparams["dh_vec"],
        gconsts["atom_oh"], node_mask[:, None], gconsts["snorm"],
        kparams["enc_node_w"], kparams["lm_w1"], kparams["lm_vec"],
        kparams["lm_w2"], kparams["lm_b2"], gconsts["target_oh"],
    )
    out = pl.pallas_call(
        partial(_graph_ae_kernel,
                k_eig=k, e_half=e // 2,
                mask_token_lane=int(cfg["num_atom_type"]),
                w_atom=float(cfg["masked_atom_loss"]),
                w_pe=float(cfg["masked_pe_loss"])),
        out_shape=jax.ShapeDtypeStruct((1, LANE), jnp.float32),
        grid=(1,),
        in_specs=[_full_spec(a.shape) for a in inputs],
        out_specs=_full_spec((1, LANE)),
    )(*inputs)
    return out[0, 0]


# --------------------------------------------------------------------------
# Per-step glue mirroring the PyTorch module
# --------------------------------------------------------------------------
def encoding_mask_noise(key, u, mask_ratio, noise_val):
    # x_masked[:,0] = num_atom_type is realized in-kernel from node_mask, so only
    # u_masked and the mask itself are built here (same randomness structure as the ref).
    num_nodes = u.shape[0]
    k1, k2 = jax.random.split(key)
    perm = jax.random.permutation(k1, num_nodes)
    num_mask = int(mask_ratio * num_nodes)
    mask_nodes = perm[:num_mask]
    pos_noise = noise_val * jax.random.normal(k2, (num_mask, u.shape[1]), jnp.float32)
    u_masked = u.at[mask_nodes].add(pos_noise)
    return u_masked, mask_nodes


def graph_autoencoder_forward(kparams, gconsts, cfg, rng):
    u = gconsts["u"]
    n = u.shape[0]
    u_masked, mask_tokens = encoding_mask_noise(rng, u, cfg["mask_ratio"], cfg["noise_val"])
    node_mask = jnp.zeros((n,), jnp.float32).at[mask_tokens].set(1.0)
    u_cat = jnp.concatenate([u, u_masked], axis=1)       # pack u / u_masked -> one in-kernel dot
    return graph_autoencoder_loss(kparams, gconsts, u_cat, node_mask, cfg)


# --------------------------------------------------------------------------
# One-time prep (hoisted out of the per-step path)
# --------------------------------------------------------------------------
def prepare_graph_constants(batch, num_atom_type):
    """Once per graph: NaN clean-up, node/edge one-hots, edge-layout check."""
    edge_index = np.asarray(jax.device_get(batch["edge_index"]))
    src, dst = edge_index[0], edge_index[1]
    e = src.shape[0]
    n = int(batch["x"].shape[0])
    half = e // 2
    # In-kernel undirected averaging pairs edge i with edge i + E/2.
    assert (e % 2 == 0
            and np.array_equal(src[:half], dst[half:])
            and np.array_equal(dst[:half], src[half:])), \
        "edge_index must list every undirected edge twice with reverse(i) == i + E/2"

    u = jnp.where(jnp.isnan(batch["EigVecs"]), 0.0, batch["EigVecs"]).astype(jnp.float32)
    _ = jnp.where(jnp.isnan(batch["EigVals"]), 0.0, batch["EigVals"])   # cleaned, unused (as in ref)

    src_oh = jax.nn.one_hot(src, n, dtype=jnp.float32)                  # [E, N]
    dst_oh = jax.nn.one_hot(dst, n, dtype=jnp.float32)
    x0 = batch["x"][:, 0]
    a1 = num_atom_type + 1
    a1p = _rup(a1, 16)                                                   # bf16 MXU contraction dim only
    atom_oh = jnp.pad(jax.nn.one_hot(x0, a1, dtype=jnp.float32), ((0, 0), (0, a1p - a1)))
    target_oh = jax.nn.one_hot(x0, num_atom_type, dtype=jnp.float32)
    return {"u": u, "src_oh": src_oh, "dst_oh": dst_oh, "atom_oh": atom_oh,
            "target_oh": target_oh, "snorm": batch["snorm_n"].astype(jnp.float32)}


def prepare_params(p, num_atom_type):
    """Once per parameter set: kernel-layout slabs; bf16 for MXU operands (f32 accumulate)."""
    bf16 = jnp.bfloat16
    hid = p["dh_dense_w"].shape[1]
    dh_vec = jnp.stack([p["dh_dense_b"], p["dh_ln_g"], p["dh_ln_b"], p["dh_out_w"][:, 0],
                        jnp.broadcast_to(p["dh_out_b"].astype(jnp.float32), (hid,))], axis=0)
    lm_vec = jnp.stack([p["lm_dense_b"], p["lm_ln_g"], p["lm_ln_b"]], axis=0)
    a1 = num_atom_type + 1
    a1p = _rup(a1, 16)
    enc_node_w = jnp.pad(p["enc_node_w"], ((0, a1p - a1), (0, 0)))
    return {
        "enc_pe_w":   p["enc_pe_w"][None, :].astype(jnp.float32),        # [1, D]   (VPU use)
        "enc_node_w": enc_node_w.astype(bf16),                           # [A1P, D]
        "dh_w1":      p["dh_dense_w"].astype(bf16),                      # [D, 128]
        "dh_vec":     dh_vec.astype(jnp.float32),                        # [5, 128]
        "lm_w1":      p["lm_dense_w"].astype(bf16),                      # [D, D]
        "lm_vec":     lm_vec.astype(jnp.float32),                        # [3, D]
        "lm_w2":      p["lm_out_w"].astype(bf16),                        # [D, C]
        "lm_b2":      p["lm_out_b"][None, :].astype(jnp.float32),        # [1, C]
    }


# --------------------------------------------------------------------------
# Deterministic parameter / input construction
# --------------------------------------------------------------------------
def init_params(key, embed_dim, num_atom_type, dh_hidden=128):
    ks = jax.random.split(key, 8)
    s = 0.05
    return {
        "enc_node_w": s * jax.random.normal(ks[0], (num_atom_type + 1, embed_dim)),
        "enc_pe_w":   s * jax.random.normal(ks[1], (embed_dim,)),
        "lm_dense_w": s * jax.random.normal(ks[2], (embed_dim, embed_dim)),
        "lm_dense_b": jnp.zeros((embed_dim,), jnp.float32),
        "lm_ln_g":    jnp.ones((embed_dim,), jnp.float32),
        "lm_ln_b":    jnp.zeros((embed_dim,), jnp.float32),
        "lm_out_w":   s * jax.random.normal(ks[3], (embed_dim, num_atom_type)),
        "lm_out_b":   jnp.zeros((num_atom_type,), jnp.float32),
        "dh_dense_w": s * jax.random.normal(ks[4], (embed_dim, dh_hidden)),
        "dh_dense_b": jnp.zeros((dh_hidden,), jnp.float32),
        "dh_ln_g":    jnp.ones((dh_hidden,), jnp.float32),
        "dh_ln_b":    jnp.zeros((dh_hidden,), jnp.float32),
        "dh_out_w":   s * jax.random.normal(ks[5], (dh_hidden, 1)),
        "dh_out_b":   jnp.zeros((1,), jnp.float32),
    }


def make_batch(key, num_nodes, eig_k, num_atom_type):
    k1, k2, k3 = jax.random.split(key, 3)
    # ring graph, both directions -> symmetric edge set with reverse(i) = i + E/2
    src = jnp.arange(num_nodes, dtype=jnp.int32)
    dst = (src + 1) % num_nodes
    edge_index = jnp.stack([jnp.concatenate([src, dst]),
                            jnp.concatenate([dst, src])], axis=0)
    x = jax.random.randint(k1, (num_nodes, 2), 0, num_atom_type, jnp.int32)
    eigvecs = jax.random.normal(k2, (num_nodes, eig_k), jnp.float32)
    eigvals = jax.random.normal(k3, (num_nodes, eig_k), jnp.float32)
    eigvecs = eigvecs.at[0, -1].set(jnp.nan)    # exercise the isnan clean-up
    eigvals = eigvals.at[0, -1].set(jnp.nan)
    snorm_n = jnp.full((num_nodes, 1), 1.0 / math.sqrt(num_nodes), jnp.float32)
    edge_attr = jnp.zeros((edge_index.shape[1], 4), jnp.float32)  # unused by stand-in encoder
    return {"x": x, "edge_index": edge_index, "edge_attr": edge_attr,
            "snorm_n": snorm_n, "EigVecs": eigvecs, "EigVals": eigvals}


if __name__ == "__main__":
    NUM_NODES, EIG_K, EMBED_DIM, NUM_ATOM_TYPE = 16, 8, 32, 8
    cfg = {
        "mask_ratio": 0.5, "noise_val": 0.1, "num_atom_type": NUM_ATOM_TYPE,
        "masked_atom_loss": 1.0, "masked_pe_loss": 1.0,
        "atom_recon_type": "ce", "alpha_l": 1.0,
    }

    root = jax.random.PRNGKey(0)
    k_param, k_batch, k_mask = jax.random.split(root, 3)
    params = init_params(k_param, EMBED_DIM, NUM_ATOM_TYPE)
    batch = make_batch(k_batch, NUM_NODES, EIG_K, NUM_ATOM_TYPE)

    # Hoisted one-time prep (graph structure + parameter layouts) -- outside the step.
    gconsts = prepare_graph_constants(batch, NUM_ATOM_TYPE)
    kparams = prepare_params(params, NUM_ATOM_TYPE)

    step = jax.jit(lambda kp, gc, key: graph_autoencoder_forward(kp, gc, cfg, key))
    loss = step(kparams, gconsts, k_mask)
    jax.block_until_ready(loss)
    assert loss.shape == () and bool(jnp.isfinite(loss))
    print("KERNEL_OK")
</pallas_src>

<mosaic_0001>
module attributes {stable_mosaic.version = 11 : i64} {
  func.func @_graph_ae_kernel(%arg0: i32, %arg1: memref<32x16xf32, #tpu.memory_space<vmem>>, %arg2: memref<32x16xf32, #tpu.memory_space<vmem>>, %arg3: memref<1x16xf32, #tpu.memory_space<vmem>>, %arg4: memref<16x16xf32, #tpu.memory_space<vmem>>, %arg5: memref<1x32xf32, #tpu.memory_space<vmem>>, %arg6: memref<32x128xbf16, #tpu.memory_space<vmem>>, %arg7: memref<5x128xf32, #tpu.memory_space<vmem>>, %arg8: memref<16x16xf32, #tpu.memory_space<vmem>>, %arg9: memref<16x1xf32, #tpu.memory_space<vmem>>, %arg10: memref<16x1xf32, #tpu.memory_space<vmem>>, %arg11: memref<16x32xbf16, #tpu.memory_space<vmem>>, %arg12: memref<32x32xbf16, #tpu.memory_space<vmem>>, %arg13: memref<3x32xf32, #tpu.memory_space<vmem>>, %arg14: memref<32x8xbf16, #tpu.memory_space<vmem>>, %arg15: memref<1x8xf32, #tpu.memory_space<vmem>>, %arg16: memref<16x8xf32, #tpu.memory_space<vmem>>, %arg17: memref<1x128xf32, #tpu.memory_space<vmem>>) attributes {dimension_semantics = [#tpu.dimension_semantics<arbitrary>], iteration_bounds = array<i64: 1>, scalar_prefetch = 0 : i64, scratch_operands = 0 : i64, tpu.core_type = #tpu.core_type<tc>, window_params = [{pipeline_mode = #tpu.pipeline_mode<synchronous>, transform_indices = @transform_0, window_bounds = array<i64: 32, 16>}, {pipeline_mode = #tpu.pipeline_mode<synchronous>, transform_indices = @transform_1, window_bounds = array<i64: 32, 16>}, {pipeline_mode = #tpu.pipeline_mode<synchronous>, transform_indices = @transform_2, window_bounds = array<i64: 1, 16>}, {pipeline_mode = #tpu.pipeline_mode<synchronous>, transform_indices = @transform_3, window_bounds = array<i64: 16, 16>}, {pipeline_mode = #tpu.pipeline_mode<synchronous>, transform_indices = @transform_4, window_bounds = array<i64: 1, 32>}, {pipeline_mode = #tpu.pipeline_mode<synchronous>, transform_indices = @transform_5, window_bounds = array<i64: 32, 128>}, {pipeline_mode = #tpu.pipeline_mode<synchronous>, transform_indices = @transform_6, window_bounds = array<i64: 5, 128>}, {pipeline_mode = #tpu.pipeline_mode<synchronous>, transform_indices = @transform_7, window_bounds = array<i64: 16, 16>}, {pipeline_mode = #tpu.pipeline_mode<synchronous>, transform_indices = @transform_8, window_bounds = array<i64: 16, 1>}, {pipeline_mode = #tpu.pipeline_mode<synchronous>, transform_indices = @transform_9, window_bounds = array<i64: 16, 1>}, {pipeline_mode = #tpu.pipeline_mode<synchronous>, transform_indices = @transform_10, window_bounds = array<i64: 16, 32>}, {pipeline_mode = #tpu.pipeline_mode<synchronous>, transform_indices = @transform_11, window_bounds = array<i64: 32, 32>}, {pipeline_mode = #tpu.pipeline_mode<synchronous>, transform_indices = @transform_12, window_bounds = array<i64: 3, 32>}, {pipeline_mode = #tpu.pipeline_mode<synchronous>, transform_indices = @transform_13, window_bounds = array<i64: 32, 8>}, {pipeline_mode = #tpu.pipeline_mode<synchronous>, transform_indices = @transform_14, window_bounds = array<i64: 1, 8>}, {pipeline_mode = #tpu.pipeline_mode<synchronous>, transform_indices = @transform_15, window_bounds = array<i64: 16, 8>}, {pipeline_mode = #tpu.pipeline_mode<synchronous>, transform_indices = @transform_16, window_bounds = array<i64: 1, 128>}]} {
    %c0 = arith.constant 0 : index
    %c0_0 = arith.constant 0 : index
    %0 = vector.load %arg1[%c0, %c0_0] : memref<32x16xf32, #tpu.memory_space<vmem>>, vector<32x16xf32>
    %c0_1 = arith.constant 0 : index
    %c0_2 = arith.constant 0 : index
    %1 = vector.load %arg2[%c0_1, %c0_2] : memref<32x16xf32, #tpu.memory_space<vmem>>, vector<32x16xf32>
    %2 = arith.subf %0, %1 : vector<32x16xf32>
    %3 = arith.truncf %2 : vector<32x16xf32> to vector<32x16xbf16>
    %c0_3 = arith.constant 0 : index
    %c0_4 = arith.constant 0 : index
    %4 = vector.load %arg4[%c0_3, %c0_4] : memref<16x16xf32, #tpu.memory_space<vmem>>, vector<16x16xf32>
    %5 = arith.truncf %4 : vector<16x16xf32> to vector<16x16xbf16>
    %cst = arith.constant dense<0.000000e+00> : vector<32x16xf32>
    %6 = tpu.matmul %3, %5, %cst {dimension_numbers = #tpu.dot_dimension_numbers<[1], [0], [0], [1], [0, 0, 1, 1], [], []>} : vector<32x16xbf16>, vector<16x16xbf16>, vector<32x16xf32> -> vector<32x16xf32>
    %7 = arith.mulf %6, %6 : vector<32x16xf32>
    %8 = vector.extract_strided_slice %7 {offsets = [0, 0], sizes = [32, 8], strides = [1, 1]} : vector<32x16xf32> to vector<32x8xf32>
    %cst_5 = arith.constant dense<0.000000e+00> : vector<32xf32>
    %9 = vector.multi_reduction <add>, %8, %cst_5 [1] : vector<32x8xf32> to vector<32xf32>
    %10 = vector.shape_cast %9 : vector<32xf32> to vector<32x1xf32>
    %11 = math.sqrt %10 : vector<32x1xf32>
    %12 = vector.extract_strided_slice %7 {offsets = [0, 8], sizes = [32, 8], strides = [1, 1]} : vector<32x16xf32> to vector<32x8xf32>
    %cst_6 = arith.constant dense<0.000000e+00> : vector<32xf32>
    %13 = vector.multi_reduction <add>, %12, %cst_6 [1] : vector<32x8xf32> to vector<32xf32>
    %14 = vector.shape_cast %13 : vector<32xf32> to vector<32x1xf32>
    %15 = math.sqrt %14 : vector<32x1xf32>
    %c0_7 = arith.constant 0 : index
    %c0_8 = arith.constant 0 : index
    %16 = vector.load %arg5[%c0_7, %c0_8] : memref<1x32xf32, #tpu.memory_space<vmem>>, vector<1x32xf32>
    %17 = vector.broadcast %15 : vector<32x1xf32> to vector<32x32xf32>
    %18 = vector.broadcast %16 : vector<1x32xf32> to vector<32x32xf32>
    %19 = arith.mulf %17, %18 : vector<32x32xf32>
    %20 = arith.mulf %19, %19 : vector<32x32xf32>
    %21 = arith.mulf %19, %20 : vector<32x32xf32>
    %cst_9 = arith.constant 4.471500e-02 : f32
    %22 = vector.broadcast %cst_9 : f32 to vector<32x32xf32>
    %23 = arith.mulf %22, %21 : vector<32x32xf32>
    %24 = arith.addf %19, %23 : vector<32x32xf32>
    %cst_10 = arith.constant 0.797884583 : f32
    %25 = vector.broadcast %cst_10 : f32 to vector<32x32xf32>
    %26 = arith.mulf %25, %24 : vector<32x32xf32>
    %27 = math.tanh %26 : vector<32x32xf32>
    %cst_11 = arith.constant 1.000000e+00 : f32
    %28 = vector.broadcast %cst_11 : f32 to vector<32x32xf32>
    %29 = arith.addf %28, %27 : vector<32x32xf32>
    %cst_12 = arith.constant 5.000000e-01 : f32
    %30 = vector.broadcast %cst_12 : f32 to vector<32x32xf32>
    %31 = arith.mulf %30, %29 : vector<32x32xf32>
    %32 = arith.mulf %19, %31 : vector<32x32xf32>
    %33 = arith.truncf %32 : vector<32x32xf32> to vector<32x32xbf16>
    %c0_13 = arith.constant 0 : index
    %c0_14 = arith.constant 0 : index
    %34 = vector.load %arg6[%c0_13, %c0_14] : memref<32x128xbf16, #tpu.memory_space<vmem>>, vector<32x128xbf16>
    %cst_15 = arith.constant dense<0.000000e+00> : vector<32x128xf32>
    %35 = tpu.matmul %33, %34, %cst_15 {dimension_numbers = #tpu.dot_dimension_numbers<[1], [0], [0], [1], [0, 0, 1, 1], [], []>} : vector<32x32xbf16>, vector<32x128xbf16>, vector<32x128xf32> -> vector<32x128xf32>
    %c0_16 = arith.constant 0 : index
    %c0_17 = arith.constant 0 : index
    %36 = vector.load %arg7[%c0_16, %c0_17] : memref<5x128xf32, #tpu.memory_space<vmem>>, vector<1x128xf32>
    %37 = vector.broadcast %36 : vector<1x128xf32> to vector<32x128xf32>
    %38 = arith.addf %35, %37 : vector<32x128xf32>
    %39 = arith.mulf %38, %38 : vector<32x128xf32>
    %40 = arith.mulf %38, %39 : vector<32x128xf32>
    %cst_18 = arith.constant 4.471500e-02 : f32
    %41 = vector.broadcast %cst_18 : f32 to vector<32x128xf32>
    %42 = arith.mulf %41, %40 : vector<32x128xf32>
    %43 = arith.addf %38, %42 : vector<32x128xf32>
    %cst_19 = arith.constant 0.797884583 : f32
    %44 = vector.broadcast %cst_19 : f32 to vector<32x128xf32>
    %45 = arith.mulf %44, %43 : vector<32x128xf32>
    %46 = math.tanh %45 : vector<32x128xf32>
    %cst_20 = arith.constant 1.000000e+00 : f32
    %47 = vector.broadcast %cst_20 : f32 to vector<32x128xf32>
    %48 = arith.addf %47, %46 : vector<32x128xf32>
    %cst_21 = arith.constant 5.000000e-01 : f32
    %49 = vector.broadcast %cst_21 : f32 to vector<32x128xf32>
    %50 = arith.mulf %49, %48 : vector<32x128xf32>
    %51 = arith.mulf %38, %50 : vector<32x128xf32>
    %cst_22 = arith.constant dense<0.000000e+00> : vector<32xf32>
    %52 = vector.multi_reduction <add>, %51, %cst_22 [1] : vector<32x128xf32> to vector<32xf32>
    %53 = vector.shape_cast %52 : vector<32xf32> to vector<32x1xf32>
    %cst_23 = arith.constant 1.280000e+02 : f32
    %54 = vector.broadcast %cst_23 : f32 to vector<32x1xf32>
    %55 = arith.divf %53, %54 : vector<32x1xf32>
    %56 = vector.broadcast %55 : vector<32x1xf32> to vector<32x128xf32>
    %57 = arith.subf %51, %56 : vector<32x128xf32>
    %58 = arith.mulf %57, %57 : vector<32x128xf32>
    %cst_24 = arith.constant dense<0.000000e+00> : vector<32xf32>
    %59 = vector.multi_reduction <add>, %58, %cst_24 [1] : vector<32x128xf32> to vector<32xf32>
    %60 = vector.shape_cast %59 : vector<32xf32> to vector<32x1xf32>
    %cst_25 = arith.constant 1.280000e+02 : f32
    %61 = vector.broadcast %cst_25 : f32 to vector<32x1xf32>
    %62 = arith.divf %60, %61 : vector<32x1xf32>
    %63 = vector.broadcast %55 : vector<32x1xf32> to vector<32x128xf32>
    %64 = arith.subf %51, %63 : vector<32x128xf32>
    %cst_26 = arith.constant 9.99999974E-6 : f32
    %65 = vector.broadcast %cst_26 : f32 to vector<32x1xf32>
    %66 = arith.addf %62, %65 : vector<32x1xf32>
    %67 = math.rsqrt %66 : vector<32x1xf32>
    %68 = vector.broadcast %67 : vector<32x1xf32> to vector<32x128xf32>
    %69 = arith.mulf %64, %68 : vector<32x128xf32>
    %c1 = arith.constant 1 : index
    %c0_27 = arith.constant 0 : index
    %70 = vector.load %arg7[%c1, %c0_27] : memref<5x128xf32, #tpu.memory_space<vmem>>, vector<1x128xf32>
    %71 = vector.broadcast %70 : vector<1x128xf32> to vector<32x128xf32>
    %72 = arith.mulf %69, %71 : vector<32x128xf32>
    %c2 = arith.constant 2 : index
    %c0_28 = arith.constant 0 : index
    %73 = vector.load %arg7[%c2, %c0_28] : memref<5x128xf32, #tpu.memory_space<vmem>>, vector<1x128xf32>
    %74 = vector.broadcast %73 : vector<1x128xf32> to vector<32x128xf32>
    %75 = arith.addf %72, %74 : vector<32x128xf32>
    %c3 = arith.constant 3 : index
    %c0_29 = arith.constant 0 : index
    %76 = vector.load %arg7[%c3, %c0_29] : memref<5x128xf32, #tpu.memory_space<vmem>>, vector<1x128xf32>
    %77 = vector.broadcast %76 : vector<1x128xf32> to vector<32x128xf32>
    %78 = arith.mulf %75, %77 : vector<32x128xf32>
    %cst_30 = arith.constant dense<0.000000e+00> : vector<32xf32>
    %79 = vector.multi_reduction <add>, %78, %cst_30 [1] : vector<32x128xf32> to vector<32xf32>
    %80 = vector.shape_cast %79 : vector<32xf32> to vector<32x1xf32>
    %c4 = arith.constant 4 : index
    %c0_31 = arith.constant 0 : index
    %81 = vector.load %arg7[%c4, %c0_31] : memref<5x128xf32, #tpu.memory_space<vmem>>, vector<1x128xf32>
    %82 = vector.extract_strided_slice %81 {offsets = [0, 0], sizes = [1, 1], strides = [1, 1]} : vector<1x128xf32> to vector<1x1xf32>
    %83 = vector.extract_strided_slice %80 {offsets = [0, 0], sizes = [16, 1], strides = [1, 1]} : vector<32x1xf32> to vector<16x1xf32>
    %84 = vector.extract_strided_slice %80 {offsets = [16, 0], sizes = [16, 1], strides = [1, 1]} : vector<32x1xf32> to vector<16x1xf32>
    %85 = arith.addf %83, %84 : vector<16x1xf32>
    %cst_32 = arith.constant 5.000000e-01 : f32
    %86 = vector.broadcast %cst_32 : f32 to vector<16x1xf32>
    %87 = arith.mulf %86, %85 : vector<16x1xf32>
    %88 = vector.broadcast %82 : vector<1x1xf32> to vector<16x1xf32>
    %89 = arith.addf %87, %88 : vector<16x1xf32>
    %c0_33 = arith.constant 0 : index
    %c0_34 = arith.constant 0 : index
    %90 = vector.load %arg3[%c0_33, %c0_34] : memref<1x16xf32, #tpu.memory_space<vmem>>, vector<1x16xf32>
    %91 = vector.broadcast %90 : vector<1x16xf32> to vector<32x16xf32>
    %92 = arith.mulf %0, %91 : vector<32x16xf32>
    %cst_35 = arith.constant dense<0.000000e+00> : vector<32xf32>
    %93 = vector.multi_reduction <add>, %92, %cst_35 [1] : vector<32x16xf32> to vector<32xf32>
    %94 = vector.shape_cast %93 : vector<32xf32> to vector<32x1xf32>
    %95 = vector.extract_strided_slice %94 {offsets = [0, 0], sizes = [16, 1], strides = [1, 1]} : vector<32x1xf32> to vector<16x1xf32>
    %96 = vector.extract_strided_slice %94 {offsets = [16, 0], sizes = [16, 1], strides = [1, 1]} : vector<32x1xf32> to vector<16x1xf32>
    %97 = arith.addf %95, %96 : vector<16x1xf32>
    %98 = vector.extract_strided_slice %11 {offsets = [0, 0], sizes = [16, 1], strides = [1, 1]} : vector<32x1xf32> to vector<16x1xf32>
    %99 = arith.subf %89, %98 : vector<16x1xf32>
    %100 = math.absf %99 : vector<16x1xf32>
    %cst_36 = arith.constant 1.000000e+00 : f32
    %101 = vector.broadcast %cst_36 : f32 to vector<16x1xf32>
    %102 = arith.cmpf olt, %100, %101 : vector<16x1xf32>
    %cst_37 = arith.constant 5.000000e-01 : f32
    %103 = vector.broadcast %cst_37 : f32 to vector<16x1xf32>
    %104 = arith.mulf %103, %99 : vector<16x1xf32>
    %105 = arith.mulf %104, %99 : vector<16x1xf32>
    %cst_38 = arith.constant 5.000000e-01 : f32
    %106 = vector.broadcast %cst_38 : f32 to vector<16x1xf32>
    %107 = arith.subf %100, %106 : vector<16x1xf32>
    %108 = arith.select %102, %105, %107 : vector<16x1xi1>, vector<16x1xf32>
    %109 = arith.mulf %108, %97 : vector<16x1xf32>
    %110 = vector.shape_cast %109 : vector<16x1xf32> to vector<1x16x1xf32>
    %cst_39 = arith.constant dense<0.000000e+00> : vector<1xf32>
    %111 = vector.multi_reduction <add>, %110, %cst_39 [1, 2] : vector<1x16x1xf32> to vector<1xf32>
    %112 = vector.shape_cast %111 : vector<1xf32> to vector<1x1x1xf32>
    %113 = vector.extract %112[0, 0, 0] : f32 from vector<1x1x1xf32>
    %114 = vector.broadcast %113 : f32 to vector<1x1xf32>
    %115 = vector.shape_cast %94 : vector<32x1xf32> to vector<1x32x1xf32>
    %cst_40 = arith.constant dense<0.000000e+00> : vector<1xf32>
    %116 = vector.multi_reduction <add>, %115, %cst_40 [1, 2] : vector<1x32x1xf32> to vector<1xf32>
    %117 = vector.shape_cast %116 : vector<1xf32> to vector<1x1x1xf32>
    %118 = vector.extract %117[0, 0, 0] : f32 from vector<1x1x1xf32>
    %119 = vector.broadcast %118 : f32 to vector<1x1xf32>
    %cst_41 = arith.constant 1.000000e+00 : f32
    %120 = vector.broadcast %cst_41 : f32 to vector<1x1xf32>
    %121 = arith.maximumf %119, %120 : vector<1x1xf32>
    %122 = arith.divf %114, %121 : vector<1x1xf32>
    %c0_42 = arith.constant 0 : index
    %c0_43 = arith.constant 0 : index
    %123 = vector.load %arg9[%c0_42, %c0_43] : memref<16x1xf32, #tpu.memory_space<vmem>>, vector<16x1xf32>
    %c0_44 = arith.constant 0 : index
    %c0_45 = arith.constant 0 : index
    %124 = vector.load %arg8[%c0_44, %c0_45] : memref<16x16xf32, #tpu.memory_space<vmem>>, vector<16x16xf32>
    %125 = tpu.iota {dimensions = array<i32: 1>} : vector<16x16xi32>
    %c8_i32 = arith.constant 8 : i32
    %126 = vector.broadcast %c8_i32 : i32 to vector<16x16xi32>
    %127 = arith.cmpi eq, %125, %126 : vector<16x16xi32>
    %128 = arith.extui %127 : vector<16x16xi1> to vector<16x16xi32>
    %129 = arith.sitofp %128 : vector<16x16xi32> to vector<16x16xf32>
    %cst_46 = arith.constant 1.000000e+00 : f32
    %130 = vector.broadcast %cst_46 : f32 to vector<16x1xf32>
    %131 = arith.subf %130, %123 : vector<16x1xf32>
    %132 = vector.broadcast %131 : vector<16x1xf32> to vector<16x16xf32>
    %133 = arith.mulf %124, %132 : vector<16x16xf32>
    %134 = vector.broadcast %123 : vector<16x1xf32> to vector<16x16xf32>
    %135 = arith.mulf %129, %134 : vector<16x16xf32>
    %136 = arith.addf %133, %135 : vector<16x16xf32>
    %137 = arith.truncf %136 : vector<16x16xf32> to vector<16x16xbf16>
    %c0_47 = arith.constant 0 : index
    %c0_48 = arith.constant 0 : index
    %138 = vector.load %arg11[%c0_47, %c0_48] : memref<16x32xbf16, #tpu.memory_space<vmem>>, vector<16x32xbf16>
    %cst_49 = arith.constant dense<0.000000e+00> : vector<16x32xf32>
    %139 = tpu.matmul %137, %138, %cst_49 {dimension_numbers = #tpu.dot_dimension_numbers<[1], [0], [0], [1], [0, 0, 1, 1], [], []>} : vector<16x16xbf16>, vector<16x32xbf16>, vector<16x32xf32> -> vector<16x32xf32>
    %c0_50 = arith.constant 0 : index
    %c0_51 = arith.constant 0 : index
    %140 = vector.load %arg10[%c0_50, %c0_51] : memref<16x1xf32, #tpu.memory_space<vmem>>, vector<16x1xf32>
    %141 = vector.broadcast %140 : vector<16x1xf32> to vector<16x32xf32>
    %142 = arith.mulf %139, %141 : vector<16x32xf32>
    %143 = arith.mulf %142, %142 : vector<16x32xf32>
    %144 = arith.mulf %142, %143 : vector<16x32xf32>
    %cst_52 = arith.constant 4.471500e-02 : f32
    %145 = vector.broadcast %cst_52 : f32 to vector<16x32xf32>
    %146 = arith.mulf %145, %144 : vector<16x32xf32>
    %147 = arith.addf %142, %146 : vector<16x32xf32>
    %cst_53 = arith.constant 0.797884583 : f32
    %148 = vector.broadcast %cst_53 : f32 to vector<16x32xf32>
    %149 = arith.mulf %148, %147 : vector<16x32xf32>
    %150 = math.tanh %149 : vector<16x32xf32>
    %cst_54 = arith.constant 1.000000e+00 : f32
    %151 = vector.broadcast %cst_54 : f32 to vector<16x32xf32>
    %152 = arith.addf %151, %150 : vector<16x32xf32>
    %cst_55 = arith.constant 5.000000e-01 : f32
    %153 = vector.broadcast %cst_55 : f32 to vector<16x32xf32>
    %154 = arith.mulf %153, %152 : vector<16x32xf32>
    %155 = arith.mulf %142, %154 : vector<16x32xf32>
    %156 = arith.truncf %155 : vector<16x32xf32> to vector<16x32xbf16>
    %c0_56 = arith.constant 0 : index
    %c0_57 = arith.constant 0 : index
    %157 = vector.load %arg12[%c0_56, %c0_57] : memref<32x32xbf16, #tpu.memory_space<vmem>>, vector<32x32xbf16>
    %cst_58 = arith.constant dense<0.000000e+00> : vector<16x32xf32>
    %158 = tpu.matmul %156, %157, %cst_58 {dimension_numbers = #tpu.dot_dimension_numbers<[1], [0], [0], [1], [0, 0, 1, 1], [], []>} : vector<16x32xbf16>, vector<32x32xbf16>, vector<16x32xf32> -> vector<16x32xf32>
    %c0_59 = arith.constant 0 : index
    %c0_60 = arith.constant 0 : index
    %159 = vector.load %arg13[%c0_59, %c0_60] : memref<3x32xf32, #tpu.memory_space<vmem>>, vector<1x32xf32>
    %160 = vector.broadcast %159 : vector<1x32xf32> to vector<16x32xf32>
    %161 = arith.addf %158, %160 : vector<16x32xf32>
    %162 = arith.mulf %161, %161 : vector<16x32xf32>
    %163 = arith.mulf %161, %162 : vector<16x32xf32>
    %cst_61 = arith.constant 4.471500e-02 : f32
    %164 = vector.broadcast %cst_61 : f32 to vector<16x32xf32>
    %165 = arith.mulf %164, %163 : vector<16x32xf32>
    %166 = arith.addf %161, %165 : vector<16x32xf32>
    %cst_62 = arith.constant 0.797884583 : f32
    %167 = vector.broadcast %cst_62 : f32 to vector<16x32xf32>
    %168 = arith.mulf %167, %166 : vector<16x32xf32>
    %169 = math.tanh %168 : vector<16x32xf32>
    %cst_63 = arith.constant 1.000000e+00 : f32
    %170 = vector.broadcast %cst_63 : f32 to vector<16x32xf32>
    %171 = arith.addf %170, %169 : vector<16x32xf32>
    %cst_64 = arith.constant 5.000000e-01 : f32
    %172 = vector.broadcast %cst_64 : f32 to vector<16x32xf32>
    %173 = arith.mulf %172, %171 : vector<16x32xf32>
    %174 = arith.mulf %161, %173 : vector<16x32xf32>
    %cst_65 = arith.constant dense<0.000000e+00> : vector<16xf32>
    %175 = vector.multi_reduction <add>, %174, %cst_65 [1] : vector<16x32xf32> to vector<16xf32>
    %176 = vector.shape_cast %175 : vector<16xf32> to vector<16x1xf32>
    %cst_66 = arith.constant 3.200000e+01 : f32
    %177 = vector.broadcast %cst_66 : f32 to vector<16x1xf32>
    %178 = arith.divf %176, %177 : vector<16x1xf32>
    %179 = vector.broadcast %178 : vector<16x1xf32> to vector<16x32xf32>
    %180 = arith.subf %174, %179 : vector<16x32xf32>
    %181 = arith.mulf %180, %180 : vector<16x32xf32>
    %cst_67 = arith.constant dense<0.000000e+00> : vector<16xf32>
    %182 = vector.multi_reduction <add>, %181, %cst_67 [1] : vector<16x32xf32> to vector<16xf32>
    %183 = vector.shape_cast %182 : vector<16xf32> to vector<16x1xf32>
    %cst_68 = arith.constant 3.200000e+01 : f32
    %184 = vector.broadcast %cst_68 : f32 to vector<16x1xf32>
    %185 = arith.divf %183, %184 : vector<16x1xf32>
    %186 = vector.broadcast %178 : vector<16x1xf32> to vector<16x32xf32>
    %187 = arith.subf %174, %186 : vector<16x32xf32>
    %cst_69 = arith.constant 9.99999974E-6 : f32
    %188 = vector.broadcast %cst_69 : f32 to vector<16x1xf32>
    %189 = arith.addf %185, %188 : vector<16x1xf32>
    %190 = math.rsqrt %189 : vector<16x1xf32>
    %191 = vector.broadcast %190 : vector<16x1xf32> to vector<16x32xf32>
    %192 = arith.mulf %187, %191 : vector<16x32xf32>
    %c1_70 = arith.constant 1 : index
    %c0_71 = arith.constant 0 : index
    %193 = vector.load %arg13[%c1_70, %c0_71] : memref<3x32xf32, #tpu.memory_space<vmem>>, vector<1x32xf32>
    %194 = vector.broadcast %193 : vector<1x32xf32> to vector<16x32xf32>
    %195 = arith.mulf %192, %194 : vector<16x32xf32>
    %c2_72 = arith.constant 2 : index
    %c0_73 = arith.constant 0 : index
    %196 = vector.load %arg13[%c2_72, %c0_73] : memref<3x32xf32, #tpu.memory_space<vmem>>, vector<1x32xf32>
    %197 = vector.broadcast %196 : vector<1x32xf32> to vector<16x32xf32>
    %198 = arith.addf %195, %197 : vector<16x32xf32>
    %199 = arith.truncf %198 : vector<16x32xf32> to vector<16x32xbf16>
    %c0_74 = arith.constant 0 : index
    %c0_75 = arith.constant 0 : index
    %200 = vector.load %arg14[%c0_74, %c0_75] : memref<32x8xbf16, #tpu.memory_space<vmem>>, vector<32x8xbf16>
    %cst_76 = arith.constant dense<0.000000e+00> : vector<16x8xf32>
    %201 = tpu.matmul %199, %200, %cst_76 {dimension_numbers = #tpu.dot_dimension_numbers<[1], [0], [0], [1], [0, 0, 1, 1], [], []>} : vector<16x32xbf16>, vector<32x8xbf16>, vector<16x8xf32> -> vector<16x8xf32>
    %c0_77 = arith.constant 0 : index
    %c0_78 = arith.constant 0 : index
    %202 = vector.load %arg15[%c0_77, %c0_78] : memref<1x8xf32, #tpu.memory_space<vmem>>, vector<1x8xf32>
    %203 = vector.broadcast %202 : vector<1x8xf32> to vector<16x8xf32>
    %204 = arith.addf %201, %203 : vector<16x8xf32>
    %cst_79 = arith.constant dense<0xFF800000> : vector<16xf32>
    %205 = vector.multi_reduction <maximumf>, %204, %cst_79 [1] : vector<16x8xf32> to vector<16xf32>
    %206 = vector.shape_cast %205 : vector<16xf32> to vector<16x1xf32>
    %207 = vector.broadcast %206 : vector<16x1xf32> to vector<16x8xf32>
    %208 = arith.subf %204, %207 : vector<16x8xf32>
    %209 = math.exp %208 : vector<16x8xf32>
    %cst_80 = arith.constant dense<0.000000e+00> : vector<16xf32>
    %210 = vector.multi_reduction <add>, %209, %cst_80 [1] : vector<16x8xf32> to vector<16xf32>
    %211 = vector.shape_cast %210 : vector<16xf32> to vector<16x1xf32>
    %212 = math.log %211 : vector<16x1xf32>
    %213 = arith.addf %206, %212 : vector<16x1xf32>
    %c0_81 = arith.constant 0 : index
    %c0_82 = arith.constant 0 : index
    %214 = vector.load %arg16[%c0_81, %c0_82] : memref<16x8xf32, #tpu.memory_space<vmem>>, vector<16x8xf32>
    %215 = arith.mulf %214, %204 : vector<16x8xf32>
    %cst_83 = arith.constant dense<0.000000e+00> : vector<16xf32>
    %216 = vector.multi_reduction <add>, %215, %cst_83 [1] : vector<16x8xf32> to vector<16xf32>
    %217 = vector.shape_cast %216 : vector<16xf32> to vector<16x1xf32>
    %218 = arith.subf %213, %217 : vector<16x1xf32>
    %219 = arith.mulf %218, %123 : vector<16x1xf32>
    %220 = vector.shape_cast %219 : vector<16x1xf32> to vector<1x16x1xf32>
    %cst_84 = arith.constant dense<0.000000e+00> : vector<1xf32>
    %221 = vector.multi_reduction <add>, %220, %cst_84 [1, 2] : vector<1x16x1xf32> to vector<1xf32>
    %222 = vector.shape_cast %221 : vector<1xf32> to vector<1x1x1xf32>
    %223 = vector.extract %222[0, 0, 0] : f32 from vector<1x1x1xf32>
    %224 = vector.broadcast %223 : f32 to vector<1x1xf32>
    %225 = vector.shape_cast %123 : vector<16x1xf32> to vector<1x16x1xf32>
    %cst_85 = arith.constant dense<0.000000e+00> : vector<1xf32>
    %226 = vector.multi_reduction <add>, %225, %cst_85 [1, 2] : vector<1x16x1xf32> to vector<1xf32>
    %227 = vector.shape_cast %226 : vector<1xf32> to vector<1x1x1xf32>
    %228 = vector.extract %227[0, 0, 0] : f32 from vector<1x1x1xf32>
    %229 = vector.broadcast %228 : f32 to vector<1x1xf32>
    %cst_86 = arith.constant 1.000000e+00 : f32
    %230 = vector.broadcast %cst_86 : f32 to vector<1x1xf32>
    %231 = arith.maximumf %229, %230 : vector<1x1xf32>
    %232 = arith.divf %224, %231 : vector<1x1xf32>
    %cst_87 = arith.constant 1.000000e+00 : f32
    %233 = vector.broadcast %cst_87 : f32 to vector<1x1xf32>
    %234 = arith.mulf %233, %232 : vector<1x1xf32>
    %cst_88 = arith.constant 1.000000e+00 : f32
    %235 = vector.broadcast %cst_88 : f32 to vector<1x1xf32>
    %236 = arith.mulf %235, %122 : vector<1x1xf32>
    %237 = arith.addf %234, %236 : vector<1x1xf32>
    %238 = tpu.iota {dimensions = array<i32: 1>} : vector<1x128xi32>
    %c0_i32 = arith.constant 0 : i32
    %239 = vector.broadcast %c0_i32 : i32 to vector<1x128xi32>
    %240 = arith.cmpi eq, %238, %239 : vector<1x128xi32>
    %cst_89 = arith.constant 0.000000e+00 : f32
    %241 = vector.shape_cast %237 : vector<1x1xf32> to vector<1x1xf32>
    %242 = vector.broadcast %241 : vector<1x1xf32> to vector<1x128xf32>
    %243 = vector.broadcast %cst_89 : f32 to vector<1x128xf32>
    %244 = arith.select %240, %242, %243 : vector<1x128xi1>, vector<1x128xf32>
    %c1_i32 = arith.constant 1 : i32
    %245 = vector.broadcast %c1_i32 : i32 to vector<1x128xi32>
    %246 = arith.cmpi eq, %238, %245 : vector<1x128xi32>
    %cst_90 = arith.constant 0.000000e+00 : f32
    %247 = vector.shape_cast %122 : vector<1x1xf32> to vector<1x1xf32>
    %248 = vector.broadcast %247 : vector<1x1xf32> to vector<1x128xf32>
    %249 = vector.broadcast %cst_90 : f32 to vector<1x128xf32>
    %250 = arith.select %246, %248, %249 : vector<1x128xi1>, vector<1x128xf32>
    %251 = arith.addf %244, %250 : vector<1x128xf32>
    %c2_i32 = arith.constant 2 : i32
    %252 = vector.broadcast %c2_i32 : i32 to vector<1x128xi32>
    %253 = arith.cmpi eq, %238, %252 : vector<1x128xi32>
    %cst_91 = arith.constant 0.000000e+00 : f32
    %254 = vector.shape_cast %232 : vector<1x1xf32> to vector<1x1xf32>
    %255 = vector.broadcast %254 : vector<1x1xf32> to vector<1x128xf32>
    %256 = vector.broadcast %cst_91 : f32 to vector<1x128xf32>
    %257 = arith.select %253, %255, %256 : vector<1x128xi1>, vector<1x128xf32>
    %258 = arith.addf %251, %257 : vector<1x128xf32>
    %c0_92 = arith.constant 0 : index
    %c0_93 = arith.constant 0 : index
    %259 = vector.load %arg17[%c0_92, %c0_93] : memref<1x128xf32, #tpu.memory_space<vmem>>, vector<1x128xf32>
    tpu.vector_store %arg17[%c0_92, %c0_93], %258 {strides = array<i32>} : memref<1x128xf32, #tpu.memory_space<vmem>>, vector<1x128xf32>,
    return
  }
  func.func @transform_0(%arg0: i32) -> (i32, i32) {
    %c0_i32 = arith.constant 0 : i32
    %c0_i32_0 = arith.constant 0 : i32
    %c0_i32_1 = arith.constant 0 : i32
    return %c0_i32, %c0_i32_0 : i32, i32
  }
  func.func @transform_1(%arg0: i32) -> (i32, i32) {
    %c0_i32 = arith.constant 0 : i32
    %c0_i32_0 = arith.constant 0 : i32
    %c0_i32_1 = arith.constant 0 : i32
    return %c0_i32, %c0_i32_0 : i32, i32
  }
  func.func @transform_2(%arg0: i32) -> (i32, i32) {
    %c0_i32 = arith.constant 0 : i32
    %c0_i32_0 = arith.constant 0 : i32
    %c0_i32_1 = arith.constant 0 : i32
    return %c0_i32, %c0_i32_0 : i32, i32
  }
  func.func @transform_3(%arg0: i32) -> (i32, i32) {
    %c0_i32 = arith.constant 0 : i32
    %c0_i32_0 = arith.constant 0 : i32
    %c0_i32_1 = arith.constant 0 : i32
    return %c0_i32, %c0_i32_0 : i32, i32
  }
  func.func @transform_4(%arg0: i32) -> (i32, i32) {
    %c0_i32 = arith.constant 0 : i32
    %c0_i32_0 = arith.constant 0 : i32
    %c0_i32_1 = arith.constant 0 : i32
    return %c0_i32, %c0_i32_0 : i32, i32
  }
  func.func @transform_5(%arg0: i32) -> (i32, i32) {
    %c0_i32 = arith.constant 0 : i32
    %c0_i32_0 = arith.constant 0 : i32
    %c0_i32_1 = arith.constant 0 : i32
    return %c0_i32, %c0_i32_0 : i32, i32
  }
  func.func @transform_6(%arg0: i32) -> (i32, i32) {
    %c0_i32 = arith.constant 0 : i32
    %c0_i32_0 = arith.constant 0 : i32
    %c0_i32_1 = arith.constant 0 : i32
    return %c0_i32, %c0_i32_0 : i32, i32
  }
  func.func @transform_7(%arg0: i32) -> (i32, i32) {
    %c0_i32 = arith.constant 0 : i32
    %c0_i32_0 = arith.constant 0 : i32
    %c0_i32_1 = arith.constant 0 : i32
    return %c0_i32, %c0_i32_0 : i32, i32
  }
  func.func @transform_8(%arg0: i32) -> (i32, i32) {
    %c0_i32 = arith.constant 0 : i32
    %c0_i32_0 = arith.constant 0 : i32
    %c0_i32_1 = arith.constant 0 : i32
    return %c0_i32, %c0_i32_0 : i32, i32
  }
  func.func @transform_9(%arg0: i32) -> (i32, i32) {
    %c0_i32 = arith.constant 0 : i32
    %c0_i32_0 = arith.constant 0 : i32
    %c0_i32_1 = arith.constant 0 : i32
    return %c0_i32, %c0_i32_0 : i32, i32
  }
  func.func @transform_10(%arg0: i32) -> (i32, i32) {
    %c0_i32 = arith.constant 0 : i32
    %c0_i32_0 = arith.constant 0 : i32
    %c0_i32_1 = arith.constant 0 : i32
    return %c0_i32, %c0_i32_0 : i32, i32
  }
  func.func @transform_11(%arg0: i32) -> (i32, i32) {
    %c0_i32 = arith.constant 0 : i32
    %c0_i32_0 = arith.constant 0 : i32
    %c0_i32_1 = arith.constant 0 : i32
    return %c0_i32, %c0_i32_0 : i32, i32
  }
  func.func @transform_12(%arg0: i32) -> (i32, i32) {
    %c0_i32 = arith.constant 0 : i32
    %c0_i32_0 = arith.constant 0 : i32
    %c0_i32_1 = arith.constant 0 : i32
    return %c0_i32, %c0_i32_0 : i32, i32
  }
  func.func @transform_13(%arg0: i32) -> (i32, i32) {
    %c0_i32 = arith.constant 0 : i32
    %c0_i32_0 = arith.constant 0 : i32
    %c0_i32_1 = arith.constant 0 : i32
    return %c0_i32, %c0_i32_0 : i32, i32
  }
  func.func @transform_14(%arg0: i32) -> (i32, i32) {
    %c0_i32 = arith.constant 0 : i32
    %c0_i32_0 = arith.constant 0 : i32
    %c0_i32_1 = arith.constant 0 : i32
    return %c0_i32, %c0_i32_0 : i32, i32
  }
  func.func @transform_15(%arg0: i32) -> (i32, i32) {
    %c0_i32 = arith.constant 0 : i32
    %c0_i32_0 = arith.constant 0 : i32
    %c0_i32_1 = arith.constant 0 : i32
    return %c0_i32, %c0_i32_0 : i32, i32
  }
  func.func @transform_16(%arg0: i32) -> (i32, i32) {
    %c0_i32 = arith.constant 0 : i32
    %c0_i32_0 = arith.constant 0 : i32
    %c0_i32_1 = arith.constant 0 : i32
    return %c0_i32, %c0_i32_0 : i32, i32
  }
}

</mosaic_0001>

<bundles_post_ra>
// kernel: _lambda_.1
= control target key start
LH: loop header
LB: loop body
LE: loop exit
PB: predicated region body
PF: predicated region fallthrough
CT: control target
= control target key end

     0   :  { %s1470_s0 = inlined_call_operand.vmem [shape: f32[32,16], index: 0, kind: input, shape index: {}]   ;;  %s1471_s1 = inlined_call_operand.vmem [shape: f32[32,16], index: 1, kind: input, shape index: {}]   ;;  %s1472_s2 = inlined_call_operand.vmem [shape: f32[1,16], index: 2, kind: input, shape index: {}]   ;;  %s1473_s3 = inlined_call_operand.vmem [shape: f32[16,16], index: 3, kind: input, shape index: {}]   ;;  %s1474_s4 = inlined_call_operand.vmem [shape: f32[1,32], index: 4, kind: input, shape index: {}]   ;;  %s1475_s5 = inlined_call_operand.vmem [shape: bf16[32,128], index: 5, kind: input, shape index: {}]   ;;  %s1476_s6 = inlined_call_operand.vmem [shape: f32[5,128], index: 6, kind: input, shape index: {}]   ;;  %s1477_s7 = inlined_call_operand.vmem [shape: f32[16,16], index: 7, kind: input, shape index: {}]   ;;  %s1478_s8 = inlined_call_operand.vmem [shape: f32[16,1], index: 8, kind: input, shape index: {}]   ;;  %s1479_s9 = inlined_call_operand.vmem [shape: f32[16,1], index: 9, kind: input, shape index: {}]   ;;  %s1480_s10 = inlined_call_operand.vmem [shape: bf16[16,32], index: 10, kind: input, shape index: {}]   ;;  %s1481_s11 = inlined_call_operand.vmem [shape: bf16[32,32], index: 11, kind: input, shape index: {}]   ;;  %s1482_s12 = inlined_call_operand.vmem [shape: f32[3,32], index: 12, kind: input, shape index: {}]   ;;  %s1483_s13 = inlined_call_operand.vmem [shape: bf16[32,8], index: 13, kind: input, shape index: {}]   ;;  %s1484_s14 = inlined_call_operand.vmem [shape: f32[1,8], index: 14, kind: input, shape index: {}]   ;;  %s1485_s15 = inlined_call_operand.vmem [shape: f32[16,8], index: 15, kind: input, shape index: {}]   ;;  %s1486_s16 = inlined_call_operand.hbm [shape: f32[1,128], index: 16, kind: output, shape index: {}]  }
   0x1   :  { %1488 = sst [smem:[#allocation5_spill]] %s1470_s0 }
   0x2   :  { %v69_v0 = vld [vmem:[%s1473_s3] sm:$0xff]  ;;  %v70_v1 = vld [vmem:[%s1473_s3 + $0x8] sm:$0xff]  ;;  %s1489_s27 = sld [smem:[#allocation5_spill]]  ;;  %v1130_v7 = vmov 0   ;;  %v61_v12 = vld [vmem:[%s1471_s1 + $0x10] sm:$0xff]  ;;  %vm72_vm0 = vcmask 130048  }
   0x3   :  { %v71_v3 = vpack.c.bf16 %v70_v1, %v69_v0  ;;  %v59_v5 = vld [vmem:[%s1471_s1] sm:$0xff]  ;;  %v60_v6 = vld [vmem:[%s1471_s1 + $0x8] sm:$0xff]  ;;  %1036 = vset.pattern.permute.xlu1 %v1130_v7  ;;  %1035 = vset.pattern.permute.xlu0 %v1130_v7  ;;  %v62_v13 = vld [vmem:[%s1471_s1 + $0x18] sm:$0xff] }
   0x4   :  { %v1264_v15 = vld [vmem:[%s1478_s8] sm:$0xff]  ;;  %v1269_v16 = vld [vmem:[%s1478_s8 + $0x8] sm:$0xff] }
   0x5   :  { %986 = vmatprep.subr.bf16.mxu0 %v71_v3  ;;  %562 = vperm.xlu1 %1036, %v1264_v15   ;;  %v546_v19 = vsub.f32 1.0, %v1264_v15  ;;  %v547_v20 = vsub.f32 1.0, %v1269_v16 }
   0x6   :  { %987 = vmatpush3.bf16.msra.mxu0 %v71_v3 }
   0x7   :  { %550 = vperm.xlu0 %1035, %v546_v19  }
   0x8   :  { %v1229_v2 = vld [vmem:[%s1489_s27] sm:$0xff]  ;;  %v1234_v4 = vld [vmem:[%s1489_s27 + $0x8] sm:$0xff]  ;;  %v1247_v10 = vld [vmem:[%s1489_s27 + $0x10] sm:$0xff] }
   0x9   :  { %v63_v8 = vsub.f32 %v1229_v2, %v59_v5  ;;  %v64_v9 = vsub.f32 %v1234_v4, %v60_v6  ;;  %v1252_v11 = vld [vmem:[%s1489_s27 + $0x18] sm:$0xff]  ;;  %v65_v14 = vsub.f32 %v1247_v10, %v61_v12  ;;  %567 = vperm.xlu1 %1036, %v1269_v16  }
   0xa   :  { %v66_v18 = vsub.f32 %v1252_v11, %v62_v13 }
   0xb   :  { %v67_v17 = vpack.c.bf16 %v64_v9, %v63_v8 }
   0xc   :  { %v68_v21 = vpack.c.bf16 %v66_v18, %v65_v14 }
   0xd   :  { %988 = vmatprep.mubr.msk.bf16.mxu0 %vm72_vm0, %v67_v17 }
   0xe   :  { %989 = vmatmul.mubr.msk.bf16.vlgmr.msra.gmra.mrb[0].mxu0 %vm72_vm0, %v68_v21 }
   0xf   :  { %21 = vsyncpa [#allocation3], 0  ;;  %555 = vperm.xlu0 %1035, %v547_v20   ;;  %v1037_v22 = vld [vmem:[%s1480_s10] sm:$0xff]   ;;  %v1131_v23 = vmov 0.0   ;;  %vm1132_vm1 = vmmov 0   ;;  %v541_v24 = vlaneseq  ;;  %v540_v33 = vld [vmem:[%s1477_s7 + $0x8] sm:$0xff] }
  0x10   :  { %1000 = vmatprep.subr.bf16.mxu0 %v1131_v23  ;;  %1002 = vmatprep.mubr.msk.bf16.mxu0 %vm1132_vm1, %v1131_v23  ;;  %v539_v28 = vld [vmem:[%s1477_s7] sm:$0xff]  ;;  %s1133_s7 = smov 120   ;;  %vm132_vm3 = vcmask 64512   ;;  %v628_v59 = vld [vmem:[%s1479_s9 + $0x8] sm:$0xff]  ;;  %vm279_vm12 = vcmask 261120   ;;  %vm503_vm14 = vcmask 7168  }
  0x11   :  { %1001 = vmatpush3.bf16.msra.mxu0 %v1037_v22  ;;  %v1285_v25 = vand.u32 127, %v541_v24  ;;  %v627_v56 = vld [vmem:[%s1479_s9] sm:$0xff]  ;;  %v1039_v63 = vld [vmem:[%s1475_s5 + $0x8] sm:$0xff]   ;;  %s1134_s17 = smov [#allocation2]  }
  0x12   :  { %1014 = vmatprep.subr.bf16.mxu0 %v1131_v23  ;;  %v1038_v62 = vld [vmem:[%s1475_s5] sm:$0xff]   ;;  %s935_s18 = sshll.u32 %s1134_s17, 4  ;;  %s936_s18 = int_to_ptr.vmem [resolvable:$true] %s935_s18 }
  0x13   :  { %vm543_vm2 = vcmp.eq.s32.totalorder %v1285_v25, 8  ;;  %992 = vmatprep.subr.bf16.mxu1 %v1038_v62  ;;  %v945_v18 = vld [vmem:[%s1474_s4] ss:$0 sm:$0xff]  ;;  %p1111_p1 = scmp.lt.s32.totalorder %s936_s18, %s936_s18 }
  0x14   :  { %v958_v26 = vsel %vm543_vm2, 1.0, %v1131_v23  ;;  %993 = vmatpush3.bf16.msra.mxu1 %v1038_v62 }
  0x15   :  { %994 = vmatprep.subr.bf16.mxu1 %v1039_v63 }
  0x18   :  { %995 = vmatpush3.bf16.msra.mxu1 %v1039_v63 }
  0x19   :  { %1006 = vmatprep.subr.bf16.mxu1 %v1131_v23 }
  0x84   :  { %v563_v27 = vpop.permute.xlu1 %562 }
  0x85   :  { %v570_v30 = vmul.f32 %v958_v26, %v563_v27 }
  0x86   :  { %v551_v29 = vpop.permute.xlu0 %550 }
  0x87   :  { %v558_v31 = vmul.f32 %v551_v29, %v539_v28 }
  0x88   :  { %v568_v32 = vpop.permute.xlu1 %567 }
  0x89   :  { %v571_v34 = vmul.f32 %v958_v26, %v568_v32  ;;  %v572_v36 = vadd.f32 %v570_v30, %v558_v31 }
  0x8e   :  { %v556_v35 = vpop.permute.xlu0 %555 }
  0x8f   :  { %v559_v37 = vmul.f32 %v556_v35, %v540_v33 }
  0x91   :  { %v573_v38 = vadd.f32 %v571_v34, %v559_v37 }
  0x93   :  { %v574_v39 = vpack.c.bf16 %v573_v38, %v572_v36 }
  0x95   :  { %1003 = vmatmul.mubr.msk.bf16.vlgmr.msra.gmra.mrb[4].mxu0 %vm72_vm0, %v574_v39 }
  0x96   :  { %1018 = vmatprep.mubr.msk.bf16.mxu0 %vm1132_vm1, %v1131_v23 }
  0xe1   :  { %v990_v40 = vpop.f32.mrb[0].mxu0 }
  0xe2   :  { %v113_v41 = vpop.f32.mrb[1].mxu0  ;;  %v130_v46 = vmul.f32 %v990_v40, %v990_v40 }
  0xe3   :  { %v1298_v42 = vmul.f32 %v113_v41, %v113_v41  ;;  %v991_v43 = vpop.f32.mrb[2].mxu0 }
  0xe4   :  { %v116_v44 = vpop.f32.mrb[3].mxu0  ;;  %v131_v47 = vmul.f32 %v991_v43, %v991_v43 }
  0xe5   :  { %v1300_v45 = vmul.f32 %v116_v44, %v116_v44  ;;  %157 = vrot.lane.b32.xlu0 %v1298_v42, %s1133_s7 }
  0xe7   :  { %159 = vrot.lane.b32.xlu1 %v1300_v45, %s1133_s7 }
  0xe9   :  { %161 = vrot.lane.b32.xlu0 %v130_v46, %s1133_s7 }
  0xeb   :  { %163 = vrot.lane.b32.xlu1 %v131_v47, %s1133_s7  ;;  %s1110_s7 = scalar_lea.vmem %s936_s18, 32 }
 0x157   :  { %v158_v48 = vpop.permute.xlu0 %157 }
 0x158   :  { %v169_v53 = vsel %vm132_vm3, %v158_v48, 0.0 }
 0x159   :  { %v160_v49 = vpop.permute.xlu1 %159 }
 0x15a   :  { %v172_v50 = vsel %vm132_vm3, %v160_v49, 0.0 }
 0x15b   :  { %v162_v51 = vpop.permute.xlu0 %161  ;;  %173 = vadd.xlane.f32.xlu1 %v172_v50 }
 0x15c   :  { %v175_v52 = vsel %vm132_vm3, %v162_v51, 0.0 }
 0x15d   :  { %176 = vadd.xlane.f32.xlu0 %v175_v52  ;;  %v164_v54 = vpop.permute.xlu1 %163 }
 0x15e   :  { %v178_v55 = vsel %vm132_vm3, %v164_v54, 0.0 }
 0x161   :  { %170 = vadd.xlane.f32.xlu0 %v169_v53 }
 0x165   :  { %179 = vadd.xlane.f32.xlu0 %v178_v55 }
 0x168   :  { %v620_v57 = vpop.f32.mrb[4].mxu0 }
 0x169   :  { %v1004_v58 = vpop.f32.mrb[5].mxu0 }
 0x16a   :  { %v623_v60 = vpop.f32.mrb[6].mxu0 }
 0x16b   :  { %v1005_v61 = vpop.f32.mrb[7].mxu0 }
 0x16c   :  { %631 = vperm.xlu1 %1036, %v627_v56  }
 0x17b   :  { %636 = vperm.xlu0 %1035, %v628_v59  }
 0x1e8   :  { %v174_v0 = vpop.xlane.xlu1 %173 }
 0x1e9   :  { %1044 = vrsqrt.f32 %v174_v0  ;;  %vm190_vm4 = vcmp.eq.f32.partialorder %v174_v0, inf  ;;  %v193_v17 = vand.u32 2147483648, %v174_v0  ;;  %vm192_vm5 = vcmp.eq.f32.partialorder %v174_v0, 0.0 }
 0x1ea   :  { %v177_v1 = vpop.xlane.xlu0 %176 }
 0x1eb   :  { %1046 = vrsqrt.f32 %v177_v1  ;;  %vm197_vm6 = vcmp.eq.f32.partialorder %v177_v1, inf  ;;  %v200_v22 = vand.u32 2147483648, %v177_v1  ;;  %vm199_vm7 = vcmp.eq.f32.partialorder %v177_v1, 0.0 }
 0x1ec   :  { %v632_v3 = vpop.permute.xlu1 %631 }
 0x1ed   :  { %v1321_v5 = vmul.f32 %v632_v3, %v620_v57 }
 0x1ee   :  { %v171_v6 = vpop.xlane.xlu0 %170 }
 0x1ef   :  { %v641_v7 = vmul.f32 %v1321_v5, %v1321_v5  ;;  %1048 = vrsqrt.f32 %v171_v6  ;;  %vm183_vm8 = vcmp.eq.f32.partialorder %v171_v6, inf  ;;  %v186_v35 = vand.u32 2147483648, %v171_v6 }
 0x1f0   :  { %vm185_vm9 = vcmp.eq.f32.partialorder %v171_v6, 0.0 }
 0x1f1   :  { %v643_v8 = vmul.f32 %v641_v7, %v1321_v5 }
 0x1f2   :  { %v180_v9 = vpop.xlane.xlu0 %179 }
 0x1f3   :  { %v1045_v12 = vpop.eup %1044  ;;  %1050 = vrsqrt.f32 %v180_v9  ;;  %v645_v19 = vmul.f32 0.044715, %v643_v8  ;;  %vm204_vm10 = vcmp.eq.f32.partialorder %v180_v9, inf  ;;  %vm206_vm11 = vcmp.eq.f32.partialorder %v180_v9, 0.0 }
 0x1f4   :  { %v189_v13 = vmul.f32 %v1045_v12, %v174_v0  ;;  %v207_v50 = vand.u32 2147483648, %v180_v9 }
 0x1f5   :  { %v1047_v14 = vpop.eup %1046  ;;  %v647_v30 = vadd.f32 %v645_v19, %v1321_v5 }
 0x1f6   :  { %v191_v20 = vsel %vm190_vm4, %v174_v0, %v189_v13  ;;  %v196_v21 = vmul.f32 %v1047_v14, %v177_v1  ;;  %vm920_vm4 = vcmp.eq.s32.totalorder %v1285_v25, 0 }
 0x1f7   :  { %v194_v24 = vsel %vm192_vm5, %v193_v17, %v191_v20  ;;  %v649_v41 = vmul.f32 0.7978846, %v647_v30  ;;  %vm922_vm5 = vcmp.eq.s32.totalorder %v1285_v25, 1 }
 0x1f8   :  { %v198_v26 = vsel %vm197_vm6, %v177_v1, %v196_v21  ;;  %v1329_v27 = vmul.f32 %v945_v18, %v194_v24  ;;  %vm925_vm6 = vcmp.eq.s32.totalorder %v1285_v25, 2 }
 0x1f9   :  { %v1049_v28 = vpop.eup %1048  ;;  %v201_v29 = vsel %vm199_vm7, %v200_v22, %v198_v26  ;;  %1052 = vtanh.f32 %v649_v41 }
 0x1fa   :  { %v1332_v31 = vmul.f32 %v945_v18, %v201_v29  ;;  %v182_v32 = vmul.f32 %v1049_v28, %v171_v6  ;;  %v637_v33 = vpop.permute.xlu0 %636  ;;  %v221_v34 = vmul.f32 %v1329_v27, %v1329_v27 }
 0x1fb   :  { %v640_v36 = vmul.f32 %v637_v33, %v623_v60 }
 0x1fc   :  { %v184_v37 = vsel %vm183_vm8, %v171_v6, %v182_v32  ;;  %v225_v38 = vmul.f32 %v221_v34, %v1329_v27  ;;  %v222_v39 = vmul.f32 %v1332_v31, %v1332_v31 }
 0x1fd   :  { %v1051_v40 = vpop.eup %1050  ;;  %v642_v43 = vmul.f32 %v640_v36, %v640_v36  ;;  %v187_v44 = vsel %vm185_vm9, %v186_v35, %v184_v37 }
 0x1fe   :  { %v203_v46 = vmul.f32 %v1051_v40, %v180_v9  ;;  %v216_v47 = vmul.f32 %v945_v18, %v187_v44  ;;  %v229_v48 = vmul.f32 0.044715, %v225_v38  ;;  %v226_v49 = vmul.f32 %v222_v39, %v1332_v31 }
 0x1ff   :  { %v644_v51 = vmul.f32 %v642_v43, %v640_v36 }
 0x200   :  { %v205_v52 = vsel %vm204_vm10, %v180_v9, %v203_v46  ;;  %v220_v53 = vmul.f32 %v216_v47, %v216_v47  ;;  %v233_v54 = vadd.f32 %v229_v48, %v1329_v27  ;;  %v230_v55 = vmul.f32 0.044715, %v226_v49 }
 0x201   :  { %v208_v56 = vsel %vm206_vm11, %v207_v50, %v205_v52  ;;  %v646_v57 = vmul.f32 0.044715, %v644_v51  ;;  %v961_v52 = vld [vmem:[%s1482_s12] ss:$0 sm:$0xff] }
 0x202   :  { %v219_v58 = vmul.f32 %v945_v18, %v208_v56  ;;  %v224_v59 = vmul.f32 %v220_v53, %v216_v47  ;;  %v237_v60 = vmul.f32 0.7978846, %v233_v54  ;;  %v234_v61 = vadd.f32 %v230_v55, %v1332_v31 }
 0x203   :  { %v648_v62 = vadd.f32 %v646_v57, %v640_v36  ;;  %v1053_v13 = vpop.eup %1052 }
 0x204   :  { %v228_v63 = vmul.f32 0.044715, %v224_v59  ;;  %1054 = vtanh.f32 %v237_v60  ;;  %v223_v0 = vmul.f32 %v219_v58, %v219_v58  ;;  %v238_v3 = vmul.f32 0.7978846, %v234_v61 }
 0x205   :  { %v650_v1 = vmul.f32 0.7978846, %v648_v62  ;;  %v653_v18 = vadd.f32 1.0, %v1053_v13 }
 0x206   :  { %v232_v6 = vadd.f32 %v228_v63, %v216_v47  ;;  %v227_v7 = vmul.f32 %v223_v0, %v219_v58 }
 0x207   :  { %1056 = vtanh.f32 %v650_v1  ;;  %v655_v22 = vmul.f32 0.5, %v653_v18 }
 0x208   :  { %v236_v8 = vmul.f32 0.7978846, %v232_v6  ;;  %v231_v9 = vmul.f32 0.044715, %v227_v7  ;;  %1058 = vtanh.f32 %v238_v3 }
 0x209   :  { %v657_v33 = vmul.f32 %v655_v22, %v1321_v5  ;;  %v1040_v5 = vld [vmem:[%s1481_s11] sm:$0xff]  }
 0x20a   :  { %1060 = vtanh.f32 %v236_v8  ;;  %v235_v12 = vadd.f32 %v231_v9, %v219_v58  ;;  %v946_v22 = vld [vmem:[%s1476_s6] ss:$0 sm:$0xff] }
 0x20c   :  { %v239_v14 = vmul.f32 0.7978846, %v235_v12 }
 0x20e   :  { %v1055_v17 = vpop.eup %1054  ;;  %1062 = vtanh.f32 %v239_v14 }
 0x20f   :  { %v245_v20 = vadd.f32 1.0, %v1055_v17 }
 0x211   :  { %v1057_v19 = vpop.eup %1056  ;;  %v249_v30 = vmul.f32 0.5, %v245_v20 }
 0x212   :  { %v1059_v21 = vpop.eup %1058  ;;  %v654_v24 = vadd.f32 1.0, %v1057_v19 }
 0x213   :  { %v246_v32 = vadd.f32 1.0, %v1059_v21  ;;  %v253_v40 = vmul.f32 %v249_v30, %v1329_v27  ;;  %v1041_v27 = vld [vmem:[%s1481_s11 + $0x8] sm:$0xff]  }
 0x214   :  { %v1061_v26 = vpop.eup %1060  ;;  %v656_v28 = vmul.f32 0.5, %v654_v24 }
 0x215   :  { %v244_v29 = vadd.f32 1.0, %v1061_v26  ;;  %v250_v43 = vmul.f32 0.5, %v246_v32 }
 0x216   :  { %v658_v34 = vmul.f32 %v656_v28, %v640_v36 }
 0x217   :  { %v248_v35 = vmul.f32 0.5, %v244_v29  ;;  %v254_v48 = vmul.f32 %v250_v43, %v1332_v31 }
 0x218   :  { %v1063_v37 = vpop.eup %1062  ;;  %v659_v38 = vpack.c.bf16 %v658_v34, %v657_v33 }
 0x219   :  { %v252_v39 = vmul.f32 %v248_v35, %v216_v47  ;;  %v247_v41 = vadd.f32 1.0, %v1063_v37 }
 0x21b   :  { %v256_v44 = vpack.c.bf16 %v253_v40, %v252_v39  ;;  %v251_v46 = vmul.f32 0.5, %v247_v41 }
 0x21d   :  { %996 = vmatprep.mubr.msk.bf16.mxu1 %vm279_vm12, %v256_v44  ;;  %v255_v49 = vmul.f32 %v251_v46, %v219_v58 }
 0x21f   :  { %v257_v36 = vpack.c.bf16 %v255_v49, %v254_v48 }
 0x221   :  { %997 = vmatmul.mubr.msk.bf16.vlgmr.msra.gmra.mrb[0].mxu1 %vm279_vm12, %v257_v36 }
 0x222   :  { %1007 = vmatpush3.bf16.msra.mxu1 %v1040_v5  ;;  %1010 = vmatprep.mubr.msk.bf16.mxu1 %vm1132_vm1, %v1131_v23 }
 0x223   :  { %1008 = vmatprep.subr.bf16.mxu1 %v1131_v23 }
 0x226   :  { %1009 = vmatpush3.bf16.msra.mxu1 %v1041_v27 }
 0x229   :  { %1011 = vmatmul.mubr.msk.bf16.vlgmr.msra.gmra.mrb[4].mxu1 %vm279_vm12, %v659_v38 }
 0x2f4   :  { %v998_v31 = vpop.f32.mrb[0].mxu1 }
 0x2f5   :  { %v320_v47 = vpop.f32.mrb[1].mxu1  ;;  %v329_v28 = vadd.f32 %v998_v31, %v946_v22 }
 0x2f6   :  { %v999_v50 = vpop.f32.mrb[2].mxu1  ;;  %v321_v24 = vadd.f32 %v946_v22, %v320_v47 }
 0x2f7   :  { %v323_v51 = vpop.f32.mrb[3].mxu1  ;;  %v332_v30 = vadd.f32 %v999_v50, %v946_v22  ;;  %v337_v33 = vmul.f32 %v329_v28, %v329_v28 }
 0x2f8   :  { %v324_v26 = vadd.f32 %v946_v22, %v323_v51  ;;  %v335_v29 = vmul.f32 %v321_v24, %v321_v24 }
 0x2f9   :  { %v338_v35 = vmul.f32 %v332_v30, %v332_v30  ;;  %v341_v38 = vmul.f32 %v337_v33, %v329_v28 }
 0x2fa   :  { %v336_v32 = vmul.f32 %v324_v26, %v324_v26  ;;  %v339_v34 = vmul.f32 %v335_v29, %v321_v24 }
 0x2fb   :  { %v342_v40 = vmul.f32 %v338_v35, %v332_v30  ;;  %v345_v43 = vmul.f32 0.044715, %v341_v38 }
 0x2fc   :  { %v718_v53 = vpop.f32.mrb[4].mxu1  ;;  %v340_v37 = vmul.f32 %v336_v32, %v324_v26  ;;  %v343_v39 = vmul.f32 0.044715, %v339_v34 }
 0x2fd   :  { %v719_v54 = vadd.f32 %v961_v52, %v718_v53  ;;  %v1012_v55 = vpop.f32.mrb[5].mxu1  ;;  %v346_v46 = vmul.f32 0.044715, %v342_v40  ;;  %v349_v5 = vadd.f32 %v345_v43, %v329_v28 }
 0x2fe   :  { %v721_v56 = vpop.f32.mrb[6].mxu1  ;;  %v344_v41 = vmul.f32 0.044715, %v340_v37  ;;  %v347_v44 = vadd.f32 %v343_v39, %v321_v24 }
 0x2ff   :  { %v725_v57 = vmul.f32 %v719_v54, %v719_v54  ;;  %v722_v58 = vadd.f32 %v961_v52, %v721_v56  ;;  %v1013_v59 = vpop.f32.mrb[7].mxu1  ;;  %v350_v27 = vadd.f32 %v346_v46, %v332_v30  ;;  %v353_v31 = vmul.f32 0.7978846, %v349_v5  ;;  %v965_v5 = vld [vmem:[%s1482_s12 + $0x1] ss:$0 sm:$0xff] }
 0x300   :  { %v348_v48 = vadd.f32 %v344_v41, %v324_v26  ;;  %v351_v49 = vmul.f32 0.7978846, %v347_v44 }
 0x301   :  { %v727_v60 = vmul.f32 %v725_v57, %v719_v54  ;;  %v726_v61 = vmul.f32 %v722_v58, %v722_v58  ;;  %v354_v47 = vmul.f32 0.7978846, %v350_v27 }
 0x302   :  { %v352_v36 = vmul.f32 0.7978846, %v348_v48 }
 0x303   :  { %v729_v62 = vmul.f32 0.044715, %v727_v60  ;;  %v728_v63 = vmul.f32 %v726_v61, %v722_v58 }
 0x305   :  { %v731_v0 = vadd.f32 %v729_v62, %v719_v54  ;;  %v730_v1 = vmul.f32 0.044715, %v728_v63 }
 0x307   :  { %v732_v3 = vadd.f32 %v730_v1, %v722_v58  ;;  %v733_v6 = vmul.f32 0.7978846, %v731_v0 }
 0x309   :  { %1064 = vtanh.f32 %v733_v6  ;;  %v734_v7 = vmul.f32 0.7978846, %v732_v3 }
 0x30b   :  { %1066 = vtanh.f32 %v734_v7 }
 0x30c   :  { %1068 = vtanh.f32 %v351_v49 }
 0x30d   :  { %1070 = vtanh.f32 %v352_v36 }
 0x30e   :  { %1072 = vtanh.f32 %v353_v31 }
 0x30f   :  { %1074 = vtanh.f32 %v354_v47 }
 0x313   :  { %v1065_v8 = vpop.eup %1064 }
 0x314   :  { %v737_v9 = vadd.f32 1.0, %v1065_v8 }
 0x315   :  { %v1067_v12 = vpop.eup %1066 }
 0x316   :  { %v739_v13 = vmul.f32 0.5, %v737_v9  ;;  %v738_v14 = vadd.f32 1.0, %v1067_v12  ;;  %v1069_v50 = vpop.eup %1068 }
 0x317   :  { %v1071_v52 = vpop.eup %1070  ;;  %v359_v55 = vadd.f32 1.0, %v1069_v50 }
 0x318   :  { %v741_v17 = vmul.f32 %v739_v13, %v719_v54  ;;  %v740_v18 = vmul.f32 0.5, %v738_v14  ;;  %v1073_v56 = vpop.eup %1072  ;;  %v360_v59 = vadd.f32 1.0, %v1071_v52 }
 0x319   :  { %v1075_v60 = vpop.eup %1074  ;;  %v363_v63 = vmul.f32 0.5, %v359_v55  ;;  %v361_v0 = vadd.f32 1.0, %v1073_v56 }
 0x31a   :  { %v743_v19 = vsel %vm279_vm12, %v741_v17, 0.0  ;;  %v742_v20 = vmul.f32 %v740_v18, %v722_v58  ;;  %v364_v6 = vmul.f32 0.5, %v360_v59  ;;  %v362_v7 = vadd.f32 1.0, %v1075_v60 }
 0x31b   :  { %744 = vadd.xlane.f32.xlu1 %v743_v19  ;;  %v367_v9 = vmul.f32 %v363_v63, %v321_v24  ;;  %v365_v12 = vmul.f32 0.5, %v361_v0  ;;  %v1042_v19 = vld [vmem:[%s1483_s13] sm:$0xff]  }
 0x31c   :  { %v746_v21 = vsel %vm279_vm12, %v742_v20, 0.0  ;;  %v368_v13 = vmul.f32 %v364_v6, %v324_v26  ;;  %v366_v14 = vmul.f32 0.5, %v362_v7  ;;  %1015 = vmatpush3.bf16.msra.mxu0 %v1042_v19  ;;  %v951_v6 = vld [vmem:[%s1476_s6 + $0x1] ss:$0 sm:$0xff] }
 0x31d   :  { %747 = vadd.xlane.f32.xlu0 %v746_v21  ;;  %1016 = vmatprep.subr.bf16.mxu0 %v1131_v23 }
 0x31e   :  { %v370_v18 = vmul.f32 %v366_v14, %v332_v30  ;;  %v953_v14 = vld [vmem:[%s1476_s6 + $0x3] ss:$0 sm:$0xff] }
 0x3a8   :  { %v745_v51 = vpop.xlane.xlu1 %744 }
 0x3a9   :  { %v750_v53 = vmul.f32 0.03125, %v745_v51  ;;  %v966_v51 = vld [vmem:[%s1482_s12 + $0x2] ss:$0 sm:$0xff] }
 0x3aa   :  { %v748_v54 = vpop.xlane.xlu0 %747 }
 0x3ab   :  { %v752_v57 = vsub.f32 %v741_v17, %v750_v53  ;;  %v751_v58 = vmul.f32 0.03125, %v748_v54  ;;  %v369_v17 = vmul.f32 %v365_v12, %v329_v28 }
 0x3ad   :  { %v753_v61 = vsub.f32 %v742_v20, %v751_v58  ;;  %v754_v62 = vmul.f32 %v752_v57, %v752_v57  ;;  %v1043_v20 = vld [vmem:[%s1483_s13 + $0x8] sm:$0xff]   ;;  %s1106_s13 = scalar_lea.vmem %s936_s18, 16 }
 0x3ae   :  { %1017 = vmatpush3.bf16.msra.mxu0 %v1043_v20  ;;  %p1107_p0 = scmp.ne.s32.totalorder %s936_s18, %s1106_s13  ;;  %p1112_p2 = scmp.lt.s32.totalorder %s1110_s7, %s1106_s13 }
 0x3af   :  { %v756_v1 = vsel %vm279_vm12, %v754_v62, 0.0  ;;  %v755_v3 = vmul.f32 %v753_v61, %v753_v61 }
 0x3b0   :  { %757 = vadd.xlane.f32.xlu1 %v756_v1  ;;  %p1113_p3 = por %p1112_p2, %p1111_p1 }
 0x3b1   :  { %v759_v8 = vsel %vm279_vm12, %v755_v3, 0.0 }
 0x3b2   :  { %760 = vadd.xlane.f32.xlu0 %v759_v8  ;;  %p1114_p4 = pnand %p1113_p3, %p1107_p0 }
 0x3b4   :  { %371 = vadd.xlane.f32.xlu1 %v367_v9 }
 0x3b6   :  { %373 = vadd.xlane.f32.xlu0 %v368_v13 }
 0x3b8   :  { %375 = vadd.xlane.f32.xlu1 %v369_v17 }
 0x3ba   :  { %377 = vadd.xlane.f32.xlu0 %v370_v18 }
 0x43d   :  { %v758_v21 = vpop.xlane.xlu1 %757 }
 0x43e   :  { %v762_v22 = vmul.f32 0.03125, %v758_v21 }
 0x43f   :  { %v761_v24 = vpop.xlane.xlu0 %760 }
 0x440   :  { %v764_v26 = vadd.f32 1e-05, %v762_v22  ;;  %v763_v28 = vmul.f32 0.03125, %v761_v24 }
 0x441   :  { %v372_v29 = vpop.xlane.xlu1 %371 }
 0x442   :  { %1076 = vrsqrt.f32 %v764_v26  ;;  %v765_v30 = vadd.f32 1e-05, %v763_v28  ;;  %v380_v32 = vmul.f32 0.0078125, %v372_v29  ;;  %v967_v29 = vld [vmem:[%s1484_s14] ss:$0 sm:$0xff] }
 0x443   :  { %v374_v33 = vpop.xlane.xlu0 %373 }
 0x444   :  { %1078 = vrsqrt.f32 %v765_v30  ;;  %v384_v34 = vsub.f32 %v367_v9, %v380_v32  ;;  %v381_v35 = vmul.f32 0.0078125, %v374_v33  ;;  %v952_v9 = vld [vmem:[%s1476_s6 + $0x2] ss:$0 sm:$0xff] }
 0x445   :  { %v376_v37 = vpop.xlane.xlu1 %375 }
 0x446   :  { %v385_v38 = vsub.f32 %v368_v13, %v381_v35  ;;  %v382_v39 = vmul.f32 0.0078125, %v376_v37  ;;  %v388_v40 = vmul.f32 %v384_v34, %v384_v34 }
 0x447   :  { %v378_v41 = vpop.xlane.xlu0 %377 }
 0x448   :  { %v386_v23 = vsub.f32 %v369_v17, %v382_v39  ;;  %v383_v43 = vmul.f32 0.0078125, %v378_v41  ;;  %392 = vadd.xlane.f32.xlu1 %v388_v40  ;;  %v389_v44 = vmul.f32 %v385_v38, %v385_v38 }
 0x44a   :  { %v387_v46 = vsub.f32 %v370_v18, %v383_v43  ;;  %394 = vadd.xlane.f32.xlu0 %v389_v44  ;;  %v390_v48 = vmul.f32 %v386_v23, %v386_v23 }
 0x44c   :  { %v1077_v49 = vpop.eup %1076  ;;  %396 = vadd.xlane.f32.xlu1 %v390_v48  ;;  %v391_v36 = vmul.f32 %v387_v46, %v387_v46 }
 0x44d   :  { %v768_v27 = vmul.f32 %v1077_v49, %v752_v57  ;;  %v133_v49 = vsel %vm132_vm3, %v1298_v42, 0.0 }
 0x44e   :  { %v1079_v31 = vpop.eup %1078  ;;  %398 = vadd.xlane.f32.xlu0 %v391_v36 }
 0x44f   :  { %v775_v47 = vmul.f32 %v965_v5, %v768_v27  ;;  %v769_v50 = vmul.f32 %v1079_v31, %v753_v61 }
 0x451   :  { %v776_v52 = vmul.f32 %v965_v5, %v769_v50  ;;  %v782_v53 = vadd.f32 %v966_v51, %v775_v47 }
 0x453   :  { %v783_v54 = vadd.f32 %v966_v51, %v776_v52 }
 0x455   :  { %v784_v55 = vpack.c.bf16 %v783_v54, %v782_v53 }
 0x457   :  { %1019 = vmatmul.mubr.msk.bf16.vlgmr.msra.gmra.mrb[8].mxu0 %vm279_vm12, %v784_v55 }
 0x4d5   :  { %v393_v56 = vpop.xlane.xlu1 %392 }
 0x4d6   :  { %v400_v20 = vmul.f32 0.0078125, %v393_v56 }
 0x4d7   :  { %v395_v58 = vpop.xlane.xlu0 %394 }
 0x4d8   :  { %v401_v21 = vmul.f32 0.0078125, %v395_v58  ;;  %v404_v22 = vadd.f32 1e-05, %v400_v20 }
 0x4d9   :  { %v397_v59 = vpop.xlane.xlu1 %396 }
 0x4da   :  { %v402_v60 = vmul.f32 0.0078125, %v397_v59  ;;  %v405_v24 = vadd.f32 1e-05, %v401_v21  ;;  %v954_v21 = vld [vmem:[%s1476_s6 + $0x4] ss:$0 sm:$0xff] }
 0x4db   :  { %v399_v62 = vpop.xlane.xlu0 %398 }
 0x4dc   :  { %v406_v57 = vadd.f32 1e-05, %v402_v60  ;;  %v403_v63 = vmul.f32 0.0078125, %v399_v62 }
 0x4de   :  { %1080 = vrsqrt.f32 %v406_v57  ;;  %v407_v0 = vadd.f32 1e-05, %v403_v63  ;;  %v876_v63 = vld [vmem:[%s1485_s15] sm:$0xff] }
 0x4e0   :  { %1082 = vrsqrt.f32 %v407_v0 }
 0x4e1   :  { %1084 = vrsqrt.f32 %v404_v22 }
 0x4e2   :  { %1086 = vrsqrt.f32 %v405_v24 }
 0x4e8   :  { %v1081_v61 = vpop.eup %1080 }
 0x4e9   :  { %v414_v1 = vmul.f32 %v1081_v61, %v386_v23 }
 0x4ea   :  { %v1083_v3 = vpop.eup %1082 }
 0x4eb   :  { %v423_v7 = vmul.f32 %v951_v6, %v414_v1  ;;  %v415_v8 = vmul.f32 %v1083_v3, %v387_v46  ;;  %v1085_v26 = vpop.eup %1084 }
 0x4ec   :  { %v1087_v28 = vpop.eup %1086  ;;  %v412_v30 = vmul.f32 %v1085_v26, %v384_v34 }
 0x4ed   :  { %v432_v12 = vadd.f32 %v952_v9, %v423_v7  ;;  %v424_v13 = vmul.f32 %v951_v6, %v415_v8  ;;  %v413_v33 = vmul.f32 %v1087_v28, %v385_v38  ;;  %v136_v38 = vsel %vm132_vm3, %v1300_v45, 0.0  ;;  %v955_v45 = vld [vmem:[%s1472_s2] ss:$0 sm:$0xff] }
 0x4ee   :  { %v421_v40 = vmul.f32 %v951_v6, %v412_v30  ;;  %v469_v56 = vmul.f32 %v955_v45, %v1229_v2  ;;  %v470_v58 = vmul.f32 %v955_v45, %v1234_v4  ;;  %v471_v60 = vmul.f32 %v955_v45, %v1247_v10  ;;  %v877_v4 = vld [vmem:[%s1485_s15 + $0x8] sm:$0xff] }
 0x4ef   :  { %v441_v17 = vmul.f32 %v953_v14, %v432_v12  ;;  %v433_v18 = vadd.f32 %v952_v9, %v424_v13  ;;  %v422_v44 = vmul.f32 %v951_v6, %v413_v33  ;;  %v472_v57 = vmul.f32 %v955_v45, %v1252_v11 }
 0x4f0   :  { %v430_v48 = vadd.f32 %v952_v9, %v421_v40  ;;  %v473_v59 = vsel %vm72_vm0, %v469_v56, 0.0  ;;  %v476_v62 = vsel %vm72_vm0, %v470_v58, 0.0  ;;  %v479_v2 = vsel %vm72_vm0, %v471_v60, 0.0 }
 0x4f1   :  { %v442_v19 = vmul.f32 %v953_v14, %v433_v18  ;;  %v431_v34 = vadd.f32 %v952_v9, %v422_v44  ;;  %v482_v0 = vsel %vm72_vm0, %v472_v57, 0.0 }
 0x4f2   :  { %v439_v5 = vmul.f32 %v953_v14, %v430_v48 }
 0x4f3   :  { %v440_v36 = vmul.f32 %v953_v14, %v431_v34 }
 0x52a   :  { %v845_v32 = vpop.f32.mrb[8].mxu0 }
 0x52b   :  { %v846_v35 = vadd.f32 %v967_v29, %v845_v32  ;;  %v1020_v37 = vpop.f32.mrb[9].mxu0 }
 0x52c   :  { %v848_v39 = vpop.f32.mrb[10].mxu0 }
 0x52d   :  { %v849_v41 = vadd.f32 %v967_v29, %v848_v39  ;;  %v1021_v23 = vpop.f32.mrb[11].mxu0  ;;  %v852_v43 = vsel %vm132_vm3, %v846_v35, -inf  ;;  %v878_v10 = vmul.f32 %v876_v63, %v846_v35  ;;  %v904_v63 = vsel %vm503_vm14, %v1269_v16, 0.0  ;;  %v1104_v16 = vld [vmem:[%s1478_s8 + $0x8] sm:$0xff] }
 0x52e   :  { %853 = vmax.xlane.f32.xlu1 %v852_v43 }
 0x52f   :  { %v855_v46 = vsel %vm132_vm3, %v849_v41, -inf  ;;  %v879_v61 = vmul.f32 %v877_v4, %v849_v41  ;;  %v880_v11 = vsel %vm132_vm3, %v878_v10, 0.0 }
 0x530   :  { %856 = vmax.xlane.f32.xlu0 %v855_v46 }
 0x531   :  { %v883_v1 = vsel %vm132_vm3, %v879_v61, 0.0 }
 0x532   :  { %134 = vadd.xlane.f32.xlu1 %v133_v49 }
 0x534   :  { %137 = vadd.xlane.f32.xlu0 %v136_v38 }
 0x536   :  { %443 = vadd.xlane.f32.xlu1 %v439_v5 }
 0x538   :  { %445 = vadd.xlane.f32.xlu0 %v440_v36 }
 0x5bb   :  { %v1399_v27 = vpop.xlane.xlu1 %853 }
 0x5bc   :  { %v858_v31 = vsub.f32 %v846_v35, %v1399_v27 }
 0x5bd   :  { %v1402_v47 = vpop.xlane.xlu0 %856 }
 0x5be   :  { %v860_v50 = vmul.f32 1.442695, %v858_v31  ;;  %v859_v51 = vsub.f32 %v849_v41, %v1402_v47 }
 0x5bf   :  { %v135_v3 = vpop.xlane.xlu1 %134 }
 0x5c0   :  { %1088 = vpow2.f32 %v860_v50  ;;  %v862_v42 = vmul.f32 1.442695, %v859_v51  ;;  %vm141_vm13 = vcmp.eq.f32.partialorder %v135_v3, inf  ;;  %vm143_vm15 = vcmp.eq.f32.partialorder %v135_v3, 0.0 }
 0x5c1   :  { %v138_v6 = vpop.xlane.xlu0 %137  ;;  %v144_v29 = vand.u32 2147483648, %v135_v3 }
 0x5c2   :  { %1090 = vpow2.f32 %v862_v42  ;;  %vm148_vm0 = vcmp.eq.f32.partialorder %v138_v6, inf  ;;  %v151_v40 = vand.u32 2147483648, %v138_v6  ;;  %vm150_vm1 = vcmp.eq.f32.partialorder %v138_v6, 0.0 }
 0x5c3   :  { %1092 = vrsqrt.f32 %v135_v3  ;;  %v444_v7 = vpop.xlane.xlu1 %443 }
 0x5c4   :  { %1094 = vrsqrt.f32 %v138_v6 }
 0x5c5   :  { %v446_v8 = vpop.xlane.xlu0 %445 }
 0x5ca   :  { %v1089_v52 = vpop.eup %1088 }
 0x5cb   :  { %v864_v53 = vsel %vm132_vm3, %v1089_v52, 0.0 }
 0x5cc   :  { %v1091_v54 = vpop.eup %1090  ;;  %865 = vadd.xlane.f32.xlu1 %v864_v53  ;;  %v903_v53 = vsel %vm503_vm14, %v1264_v15, 0.0 }
 0x5cd   :  { %v867_v55 = vsel %vm132_vm3, %v1091_v54, 0.0  ;;  %v1093_v9 = vpop.eup %1092 }
 0x5ce   :  { %868 = vadd.xlane.f32.xlu0 %v867_v55  ;;  %v1095_v13 = vpop.eup %1094 }
 0x5d0   :  { %447 = vadd.xlane.f32.xlu1 %v441_v17  ;;  %v140_v17 = vmul.f32 %v1093_v9, %v135_v3 }
 0x5d2   :  { %449 = vadd.xlane.f32.xlu0 %v442_v19  ;;  %v147_v19 = vmul.f32 %v1095_v13, %v138_v6  ;;  %v142_v24 = vsel %vm141_vm13, %v135_v3, %v140_v17 }
 0x5d3   :  { %v145_v39 = vsel %vm143_vm15, %v144_v29, %v142_v24 }
 0x5d4   :  { %474 = vadd.xlane.f32.xlu1 %v473_v59  ;;  %v149_v33 = vsel %vm148_vm0, %v138_v6, %v147_v19 }
 0x5d5   :  { %v152_v49 = vsel %vm150_vm1, %v151_v40, %v149_v33 }
 0x5d6   :  { %477 = vadd.xlane.f32.xlu0 %v476_v62 }
 0x5d8   :  { %480 = vadd.xlane.f32.xlu1 %v479_v2 }
 0x5da   :  { %483 = vadd.xlane.f32.xlu0 %v482_v0 }
 0x5dc   :  { %881 = vadd.xlane.f32.xlu1 %v880_v11 }
 0x5de   :  { %884 = vadd.xlane.f32.xlu0 %v883_v1 }
 0x659   :  { %v866_v12 = vpop.xlane.xlu1 %865 }
 0x65a   :  { %1096 = vlog2.f32 %v866_v12 }
 0x65b   :  { %v869_v14 = vpop.xlane.xlu0 %868 }
 0x65c   :  { %1098 = vlog2.f32 %v869_v14 }
 0x65d   :  { %v448_v18 = vpop.xlane.xlu1 %447 }
 0x65e   :  { %v452_v20 = vadd.f32 %v448_v18, %v444_v7 }
 0x65f   :  { %v450_v22 = vpop.xlane.xlu0 %449 }
 0x660   :  { %v454_v26 = vmul.f32 0.5, %v452_v20  ;;  %v453_v28 = vadd.f32 %v450_v22, %v446_v8  ;;  %v905_v8 = vadd.f32 %v904_v63, %v903_v53 }
 0x661   :  { %v475_v30 = vpop.xlane.xlu1 %474 }
 0x662   :  { %v460_v32 = vadd.f32 %v954_v21, %v454_v26  ;;  %v455_v35 = vmul.f32 0.5, %v453_v28  ;;  %v517_v37 = vsel %vm503_vm14, %v475_v30, 0.0 }
 0x663   :  { %v478_v41 = vpop.xlane.xlu0 %477 }
 0x664   :  { %v1097_v23 = vpop.eup %1096  ;;  %v487_v43 = vsub.f32 %v460_v32, %v145_v39  ;;  %v461_v44 = vadd.f32 %v954_v21, %v455_v35  ;;  %v518_v46 = vsel %vm503_vm14, %v478_v41, 0.0 }
 0x665   :  { %v871_v48 = vmul.f32 0.6931472, %v1097_v23  ;;  %v519_v34 = vadd.f32 %v518_v46, %v517_v37  ;;  %v481_v38 = vpop.xlane.xlu1 %480 }
 0x666   :  { %v1099_v5 = vpop.eup %1098  ;;  %v493_v36 = vmul.f32 0.5, %v487_v43  ;;  %v488_v31 = vsub.f32 %v461_v44, %v152_v49  ;;  %v489_v50 = vand.u32 2147483647, %v487_v43  ;;  %v520_v42 = vsel %vm503_vm14, %v481_v38, 0.0 }
 0x667   :  { %v873_v51 = vmul.f32 0.6931472, %v1099_v5  ;;  %v484_v52 = vpop.xlane.xlu0 %483  ;;  %v874_v45 = vadd.f32 %v871_v48, %v1399_v27  ;;  %v521_v59 = vadd.f32 %v520_v42, %v519_v34  ;;  %v485_v2 = vadd.f32 %v481_v38, %v475_v30 }
 0x668   :  { %v494_v54 = vmul.f32 0.5, %v488_v31  ;;  %vm1435_vm2 = vcmp.lt.f32.partialorder %v489_v50, 1.0  ;;  %v495_v56 = vmul.f32 %v493_v36, %v487_v43  ;;  %v956_v58 = vadd.f32 -0.5, %v489_v50 }
 0x669   :  { %v490_v60 = vand.u32 2147483647, %v488_v31  ;;  %v522_v62 = vsel %vm503_vm14, %v484_v52, 0.0  ;;  %v882_v57 = vpop.xlane.xlu1 %881  ;;  %v875_v4 = vadd.f32 %v873_v51, %v1402_v47  ;;  %v486_v1 = vadd.f32 %v484_v52, %v478_v41  ;;  %v1105_v47 = vld [vmem:[%s1478_s8] sm:$0xff] }
 0x66a   :  { %v499_v27 = vsel %vm1435_vm2, %v495_v56, %v956_v58  ;;  %v496_v15 = vmul.f32 %v494_v54, %v488_v31  ;;  %v523_v10 = vadd.f32 %v522_v62, %v521_v59  ;;  %v886_v3 = vsub.f32 %v874_v45, %v882_v57 }
 0x66b   :  { %vm492_vm3 = vcmp.lt.f32.partialorder %v490_v60, 1.0  ;;  %v957_v0 = vadd.f32 -0.5, %v490_v60  ;;  %v885_v61 = vpop.xlane.xlu0 %884  ;;  %v501_v11 = vmul.f32 %v499_v27, %v485_v2 }
 0x66c   :  { %v887_v6 = vsub.f32 %v875_v4, %v885_v61  ;;  %524 = vadd.xlane.f32.xlu0 %v523_v10  ;;  %v888_v13 = vmul.f32 %v1105_v47, %v886_v3 }
 0x66d   :  { %v500_v7 = vsel %vm492_vm3, %v496_v15, %v957_v0  ;;  %v504_v14 = vsel %vm503_vm14, %v501_v11, 0.0 }
 0x66e   :  { %v502_v9 = vmul.f32 %v500_v7, %v486_v1  ;;  %v889_v12 = vmul.f32 %v1104_v16, %v887_v6  ;;  %v890_v20 = vsel %vm503_vm14, %v888_v13, 0.0 }
 0x670   :  { %v505_v17 = vsel %vm503_vm14, %v502_v9, 0.0  ;;  %906 = vadd.xlane.f32.xlu0 %v905_v8  ;;  %v891_v19 = vsel %vm503_vm14, %v889_v12, 0.0 }
 0x671   :  { %v506_v18 = vadd.f32 %v505_v17, %v504_v14  ;;  %v892_v21 = vadd.f32 %v891_v19, %v890_v20 }
 0x673   :  { %507 = vadd.xlane.f32.xlu1 %v506_v18 }
 0x677   :  { %893 = vadd.xlane.f32.xlu1 %v892_v21 }
 0x6f9   :  { %v525_v22 = vpop.xlane.xlu0 %524 }
 0x6fa   :  { %v526_v24 = vrot.slane %v525_v22, 4 }
 0x6fc   :  { %v527_v26 = vadd.f32 %v526_v24, %v525_v22 }
 0x6fd   :  { %v907_v28 = vpop.xlane.xlu0 %906 }
 0x6fe   :  { %v908_v29 = vrot.slane %v907_v28, 4  ;;  %v528_v30 = vrot.slane %v527_v26, 2 }
 0x700   :  { %v508_v32 = vpop.xlane.xlu1 %507  ;;  %v909_v33 = vadd.f32 %v908_v29, %v907_v28  ;;  %v529_v41 = vadd.f32 %v528_v30, %v527_v26 }
 0x701   :  { %v509_v35 = vrot.slane %v508_v32, 4 }
 0x702   :  { %v910_v39 = vrot.slane %v909_v33, 2  ;;  %v530_v49 = vrot.slane %v529_v41, 1 }
 0x703   :  { %v510_v37 = vadd.f32 %v509_v35, %v508_v32 }
 0x704   :  { %v894_v40 = vpop.xlane.xlu1 %893  ;;  %v911_v48 = vadd.f32 %v910_v39, %v909_v33  ;;  %v531_v31 = vadd.f32 %v530_v49, %v529_v41 }
 0x705   :  { %v511_v23 = vrot.slane %v510_v37, 2  ;;  %v895_v43 = vrot.slane %v894_v40, 4 }
 0x706   :  { %v912_v50 = vrot.slane %v911_v48, 1 }
 0x707   :  { %v896_v44 = vadd.f32 %v895_v43, %v894_v40  ;;  %v512_v46 = vadd.f32 %v511_v23, %v510_v37 }
 0x708   :  { %v913_v52 = vadd.f32 %v912_v50, %v911_v48 }
 0x709   :  { %v897_v34 = vrot.slane %v896_v44, 2  ;;  %v513_v38 = vrot.slane %v512_v46, 1 }
 0x70b   :  { %v898_v5 = vadd.f32 %v897_v34, %v896_v44  ;;  %v514_v36 = vadd.f32 %v513_v38, %v512_v46 }
 0x70d   :  { %1022 = vpush %v514_v36  ;;  %v899_v51 = vrot.slane %v898_v5, 1 }
 0x70e   :  { %1024 = vpush %v531_v31 }
 0x70f   :  { %v900_v42 = vadd.f32 %v899_v51, %v898_v5 }
 0x711   :  { %1026 = vpush %v900_v42 }
 0x712   :  { %1028 = vpush %v913_v52 }
 0x73e   :  { %s1023_s8 = spop %1022 }
 0x73f   :  { %s1025_s30 = spop %1024  ;;  %v516_v59 = vstv %s1023_s8 }
 0x740   :  { %v533_v45 = vstv %s1025_s30 }
 0x741   :  { %v534_v53 = vmax.f32 %v533_v45, 1.0 }
 0x742   :  { %s1027_s0 = spop %1026 }
 0x743   :  { %s1029_s10 = spop %1028  ;;  %1100 = vrcp.f32 %v534_v53  ;;  %v902_v60 = vstv %s1027_s0 }
 0x744   :  { %v915_v54 = vstv %s1029_s10 }
 0x745   :  { %v916_v55 = vmax.f32 %v915_v54, 1.0 }
 0x747   :  { %1102 = vrcp.f32 %v916_v55 }
 0x74d   :  { %v1101_v56 = vpop.eup %1100 }
 0x74e   :  { %v536_v62 = vmul.f32 %v1101_v56, %v516_v59 }
 0x750   :  { %v923_v2 = vsel %vm922_vm5, %v536_v62, 0.0 }
 0x751   :  { %v1103_v58 = vpop.eup %1102 }
 0x752   :  { %v918_v57 = vmul.f32 %v1103_v58, %v902_v60 }
 0x754   :  { %v919_v63 = vadd.f32 %v918_v57, %v536_v62  ;;  %v926_v4 = vsel %vm925_vm6, %v918_v57, 0.0 }
 0x756   :  { %v921_v27 = vsel %vm920_vm4, %v919_v63, 0.0 }
 0x757   :  { %v924_v15 = vadd.f32 %v923_v2, %v921_v27 }
 0x759   :  { %v927_v0 = vadd.f32 %v926_v4, %v924_v15 }
 0x75b   :  { %928 = vst [vmem:[#allocation2] sm:$0x1] %v927_v0 }
 0x75c   :  { %1117 = shalt.err (!%p1114_p4)
}
 0x75d   :  { %s1118_s12 = scalar_lea.hbm %s1486_s16, 16 }
 0x75e   :  { %p1119_p5 = scmp.ne.s32.totalorder %s1486_s16, %s1118_s12  ;;  %p1122_p6 = scmp.lt.u32.totalorder %s1118_s12, %s1486_s16 }
 0x760   :  { %p1124_p7 = pnand %p1122_p6, %p1119_p5 }
 0x762   :  { %1127 = shalt.err (!%p1124_p7)
}
 0x763   :  { %938 = dma.vmem_to_hbm [thread:$0]  %s936_s18, 16, %s1486_s16, [#allocation3]  }
 0x764   :  { %1128 = dma.done.wait [#allocation3], 16  }
 0x765   :  { %1129 = vsyncadd [#allocation3], 4294967280 }
 0x766   :  { %942 = vsyncpa [#allocation3], 1 }

</bundles_post_ra>
